<compile_context>
chip_gen: v7x
topology: tpu7x:2x2x1
jax: 0.10.0
libtpu: 0.0.40
codegen_flags: <defaults>
</compile_context>

<pallas_src>
import functools

import jax
import jax.numpy as jnp
from jax.experimental import pallas as pl
from jax.experimental.pallas import tpu as pltpu


# Lane layout of the single fused 128-wide per-pixel output (lane-dense).
_NPAD = 128
_RPN_LO, _RPN_HI = 0, 5          # objectness + 4 anchor deltas
_DEPTH_COL = 5                   # sigmoid depth
_ALIGN_LO, _ALIGN_HI = 6, 15     # 9 alignment channels
_FEAT_LO, _FEAT_HI = 16, 32      # 16 backbone/FPN feature channels


# ----------------------------------------------------------------------------
# Fused backbone + heads + pooling kernel
# ----------------------------------------------------------------------------

def _fused_backbone_heads_kernel(x_ref, w1_ref, b1_ref, w2_ref, b2_ref,
                                 wh_ref, bh_ref, r1_ref, y_ref, ps_ref,
                                 *, hw, tm):
    # x_ref : (tm, 27)   bf16  im2col patches of the normalized image
    # w1    : (27, 32)   bf16  3x3 stem conv weights        ; b1 (1, 32)  f32
    # w2    : (32, 16)   bf16  FPN lateral 1x1 conv weights ; b2 (1, 16)  f32
    # wh    : (16, 128)  bf16  fused per-pixel heads + identity feature cols
    # bh    : (1, 128)   f32   fused head biases
    # r1    : (1, 128)   f32   rank-1 depth->alignment weights (cols 6:15)
    # y_ref : (tm, 128)  f32   lane-dense fused output
    # ps_ref: (1, 16)    f32   per-tile channel sums of features (avg pool)
    t = pl.program_id(1)

    x = x_ref[...]                                                   # bf16
    stem = jnp.dot(x, w1_ref[...], preferred_element_type=jnp.float32)
    stem = jnp.maximum(stem + b1_ref[...], 0.0)                      # ReLU
    feats = jnp.dot(stem.astype(jnp.bfloat16), w2_ref[...],
                    preferred_element_type=jnp.float32) + b2_ref[...]  # (tm,16)
    y = jnp.dot(feats.astype(jnp.bfloat16), wh_ref[...],
                preferred_element_type=jnp.float32) + bh_ref[...]      # (tm,128)

    # depth sigmoid (EUP) + rank-1 alignment term, fused in the epilogue.
    d = jax.nn.sigmoid(y[:, _DEPTH_COL:_DEPTH_COL + 1])               # (tm, 1)
    y = y + d * r1_ref[...]
    lane = jax.lax.broadcasted_iota(jnp.int32, y.shape, 1)
    y_ref[...] = jnp.where(lane == _DEPTH_COL, d, y)

    # Masked partial channel sums for the retrieval global-average-pool
    # (mask out rows padded past H*W in the last tile).
    row = jax.lax.broadcasted_iota(jnp.int32, feats.shape, 0) + t * tm
    ps_ref[...] = jnp.sum(jnp.where(row < hw, feats, 0.0),
                          axis=0, keepdims=True)


def fused_backbone_and_heads(patches, w1, b1, w2, b2, wh, bh, r1, *, hw, tm):
    """patches: (B, Mp, 27) bf16 (rows padded to a multiple of tm).

    Returns (y, psum): y (B, Mp, 128) f32 fused per-pixel output,
    psum (B, n_tiles, 1, 16) f32 per-tile feature channel sums.
    """
    B, Mp, K = patches.shape
    C1 = w1.shape[1]
    C2 = w2.shape[1]
    n_tiles = Mp // tm
    kernel = functools.partial(_fused_backbone_heads_kernel, hw=hw, tm=tm)
    y, psum = pl.pallas_call(
        kernel,
        out_shape=(
            jax.ShapeDtypeStruct((B, Mp, _NPAD), jnp.float32),
            jax.ShapeDtypeStruct((B, n_tiles, 1, C2), jnp.float32),
        ),
        grid=(B, n_tiles),
        in_specs=[
            pl.BlockSpec((None, tm, K), lambda b, t: (b, t, 0)),
            pl.BlockSpec((K, C1), lambda b, t: (0, 0)),
            pl.BlockSpec((1, C1), lambda b, t: (0, 0)),
            pl.BlockSpec((C1, C2), lambda b, t: (0, 0)),
            pl.BlockSpec((1, C2), lambda b, t: (0, 0)),
            pl.BlockSpec((C2, _NPAD), lambda b, t: (0, 0)),
            pl.BlockSpec((1, _NPAD), lambda b, t: (0, 0)),
            pl.BlockSpec((1, _NPAD), lambda b, t: (0, 0)),
        ],
        out_specs=(
            pl.BlockSpec((None, tm, _NPAD), lambda b, t: (b, t, 0)),
            pl.BlockSpec((None, None, 1, C2), lambda b, t: (b, t, 0, 0)),
        ),
        compiler_params=pltpu.CompilerParams(
            dimension_semantics=("parallel", "parallel")),
    )(patches, w1, b1, w2, b2, wh, bh, r1)
    return y, psum


def _build_im2col(x_nhwc):
    """3x3 'same'-conv patches: (B,H,W,C) -> (B, H*W, 9*C), [kh, kw, cin]."""
    B, H, W, C = x_nhwc.shape
    xp = jnp.pad(x_nhwc, ((0, 0), (1, 1), (1, 1), (0, 0)))
    taps = [xp[:, di:di + H, dj:dj + W, :]
            for di in range(3) for dj in range(3)]
    return jnp.concatenate(taps, axis=-1).reshape(B, H * W, 9 * C)


# ----------------------------------------------------------------------------
# Synthetic ROCA model (deterministic params, Pallas hot path)
# ----------------------------------------------------------------------------

def init_params(key):
    ks = jax.random.split(key, 8)
    s = 0.05
    return {
        # backbone stem: 3x3 conv 3 -> 32, ReLU (PyTorch OIHW layout)
        "stem_w": jax.random.normal(ks[0], (32, 3, 3, 3), jnp.float32) * s,
        "stem_b": jnp.zeros((32,), jnp.float32),
        # FPN lateral: 1x1 conv 32 -> 16
        "fpn_w": jax.random.normal(ks[1], (16, 32), jnp.float32) * s,
        "fpn_b": jnp.zeros((16,), jnp.float32),
        # RPN head: 1x1 conv 16 -> 5 (1 objectness + 4 anchor deltas)
        "rpn_w": jax.random.normal(ks[2], (5, 16), jnp.float32) * s,
        "rpn_b": jnp.zeros((5,), jnp.float32),
        # depth head: 1x1 conv 16 -> 1, sigmoid
        "depth_w": jax.random.normal(ks[3], (1, 16), jnp.float32) * s,
        "depth_b": jnp.zeros((1,), jnp.float32),
        # alignment head: 1x1 conv on concat(features, depth) 17 -> 9
        "align_w": jax.random.normal(ks[4], (9, 17), jnp.float32) * s,
        "align_b": jnp.zeros((9,), jnp.float32),
        # retrieval head: pooled features 16 -> 32 embedding
        "retr_w": jax.random.normal(ks[5], (16, 32), jnp.float32) * s,
        "retr_b": jnp.zeros((32,), jnp.float32),
        # pixel normalization buffers (ROCA.__init__ register_buffer)
        "pixel_mean": jnp.array([103.53, 116.28, 123.675], jnp.float32),
        "pixel_std": jnp.array([1.0, 1.0, 1.0], jnp.float32),
    }


def roca_forward(params, images):
    """ROCA.forward over an NCHW image batch (B, 3, H, W) -> data dict."""
    B, Cin, H, W = images.shape
    HW = H * W
    data = {"inputs": {}, "predictions": {}, "losses": {}, "logs": {}}
    data["inputs"]["batched_inputs"] = images

    # preprocess_image: (x - mean) / std.  Plain XLA elementwise (fuses with
    # the im2col build below); normalization happens BEFORE the bf16 cast.
    mean = params["pixel_mean"].reshape(1, Cin, 1, 1)
    std = params["pixel_std"].reshape(1, Cin, 1, 1)
    images_norm = (images.astype(jnp.float32) - mean) / std
    data["inputs"]["images"] = images_norm

    # forward_backbone + per-pixel heads + pooling partial sums: one fused
    # Pallas kernel over (batch, spatial-row-tile).
    # TODO(synk): full ResNet-FPN multi-scale backbone not reproducible from
    # the given code; a single-scale stem + lateral conv stands in for it.
    x_nhwc = jnp.transpose(images_norm, (0, 2, 3, 1))
    patches = _build_im2col(x_nhwc)                          # (B, HW, 27) f32
    tm = min(512, ((HW + 15) // 16) * 16)                    # row tile
    n_tiles = -(-HW // tm)
    Mp = n_tiles * tm
    if Mp != HW:
        patches = jnp.pad(patches, ((0, 0), (0, Mp - HW), (0, 0)))
    patches = patches.astype(jnp.bfloat16)

    C1 = params["stem_w"].shape[0]                           # 32
    C2 = params["fpn_w"].shape[0]                            # 16
    w1 = jnp.transpose(params["stem_w"], (2, 3, 1, 0)).reshape(9 * Cin, C1)
    b1 = params["stem_b"].reshape(1, C1)
    w2 = params["fpn_w"].T                                   # (32, 16)
    b2 = params["fpn_b"].reshape(1, C2)

    # Fused per-pixel head weights (single lane-dense 128-wide output).
    wh = jnp.zeros((C2, _NPAD), jnp.float32)
    wh = wh.at[:, _RPN_LO:_RPN_HI].set(params["rpn_w"].T)
    wh = wh.at[:, _DEPTH_COL:_DEPTH_COL + 1].set(params["depth_w"].T)
    wh = wh.at[:, _ALIGN_LO:_ALIGN_HI].set(params["align_w"][:, :C2].T)
    wh = wh.at[:, _FEAT_LO:_FEAT_HI].set(jnp.eye(C2, dtype=jnp.float32))
    bh = jnp.zeros((_NPAD,), jnp.float32)
    bh = bh.at[_RPN_LO:_RPN_HI].set(params["rpn_b"])
    bh = bh.at[_DEPTH_COL:_DEPTH_COL + 1].set(params["depth_b"])
    bh = bh.at[_ALIGN_LO:_ALIGN_HI].set(params["align_b"])
    r1 = jnp.zeros((_NPAD,), jnp.float32)
    r1 = r1.at[_ALIGN_LO:_ALIGN_HI].set(params["align_w"][:, C2])

    y, psum = fused_backbone_and_heads(
        patches,
        w1.astype(jnp.bfloat16), b1.astype(jnp.float32),
        w2.astype(jnp.bfloat16), b2.astype(jnp.float32),
        wh.astype(jnp.bfloat16), bh.reshape(1, _NPAD).astype(jnp.float32),
        r1.reshape(1, _NPAD).astype(jnp.float32),
        hw=HW, tm=tm)
    y = y[:, :HW, :]                                         # drop padded rows

    # features (backbone output) — identity columns 16:32 of the fused output.
    feats_nhwc = y[..., _FEAT_LO:_FEAT_HI].reshape(B, H, W, C2)
    data["predictions"]["features"] = jnp.transpose(feats_nhwc, (0, 3, 1, 2))

    # forward_proposals (synthetic RPN head; no anchor decoding / NMS).
    # TODO(synk): RPN anchor generation, box decoding and NMS are
    # data-dependent / ragged; omitted.
    rpn = y[..., _RPN_LO:_RPN_HI].reshape(B, H, W, 5)
    data["predictions"]["proposals"] = {
        "objectness_logits": jnp.transpose(rpn[..., :1], (0, 3, 1, 2)),
        "anchor_deltas": jnp.transpose(rpn[..., 1:], (0, 3, 1, 2)),
    }

    # depth head (sigmoid already applied in-kernel).
    data["predictions"]["depths"] = y[..., _DEPTH_COL].reshape(B, H, W)

    # alignment head == conv1x1(concat(feats, depth)); the rank-1 depth term
    # was added in-kernel, so this is a pure slice.
    align = y[..., _ALIGN_LO:_ALIGN_HI].reshape(B, H, W, 9)
    data["predictions"]["alignment"] = jnp.transpose(align, (0, 3, 1, 2))

    # retrieval head: per-tile channel sums came from the fused kernel; the
    # tiny (B,16)x(16,32) projection + L2 normalization stay in the wrapper.
    pooled = psum.reshape(B, n_tiles, C2).sum(axis=1) / float(HW)
    emb = jnp.maximum(pooled @ params["retr_w"] + params["retr_b"], 0.0)
    emb = emb / (jnp.linalg.norm(emb, axis=-1, keepdims=True) + 1e-6)
    data["predictions"]["retrieval_embedding"] = emb

    # TODO(synk): ROIHead box pooling / per-instance postprocess operate on
    # variable-length Instances lists; not expressible as a static Pallas grid.
    data["predictions"]["post_results"] = {
        "pred_image_depth": data["predictions"]["depths"],
        "alignment": data["predictions"]["alignment"],
        "retrieval_embedding": emb,
    }
    return data


if __name__ == "__main__":
    key = jax.random.PRNGKey(0)
    pkey, xkey = jax.random.split(key)
    params = init_params(pkey)

    B, C, H, W = 2, 3, 16, 16
    images = jax.random.uniform(xkey, (B, C, H, W), jnp.float32) * 255.0

    data = roca_forward(params, images)
    jax.block_until_ready(data["inputs"]["images"])
    jax.block_until_ready(data["predictions"]["features"])
    jax.block_until_ready(data["predictions"]["depths"])
    jax.block_until_ready(data["predictions"]["alignment"])
    jax.block_until_ready(data["predictions"]["retrieval_embedding"])

    assert data["inputs"]["images"].shape == (B, C, H, W)
    assert data["predictions"]["features"].shape == (B, 16, H, W)
    assert data["predictions"]["proposals"]["objectness_logits"].shape == (B, 1, H, W)
    assert data["predictions"]["proposals"]["anchor_deltas"].shape == (B, 4, H, W)
    assert data["predictions"]["depths"].shape == (B, H, W)
    assert data["predictions"]["alignment"].shape == (B, 9, H, W)
    assert data["predictions"]["retrieval_embedding"].shape == (B, 32)
    assert bool(jnp.isfinite(data["predictions"]["depths"]).all())
    assert bool(jnp.isfinite(data["predictions"]["alignment"]).all())
    assert bool(jnp.isfinite(data["predictions"]["retrieval_embedding"]).all())
    print("KERNEL_OK")
</pallas_src>

<mosaic_0001>
module attributes {stable_mosaic.version = 11 : i64} {
  func.func @_fused_backbone_heads_kernel(%arg0: i32, %arg1: i32, %arg2: memref<1x256x27xbf16, #tpu.memory_space<vmem>>, %arg3: memref<27x32xbf16, #tpu.memory_space<vmem>>, %arg4: memref<1x32xf32, #tpu.memory_space<vmem>>, %arg5: memref<32x16xbf16, #tpu.memory_space<vmem>>, %arg6: memref<1x16xf32, #tpu.memory_space<vmem>>, %arg7: memref<16x128xbf16, #tpu.memory_space<vmem>>, %arg8: memref<1x128xf32, #tpu.memory_space<vmem>>, %arg9: memref<1x128xf32, #tpu.memory_space<vmem>>, %arg10: memref<1x256x128xf32, #tpu.memory_space<vmem>>, %arg11: memref<1x1x1x16xf32, #tpu.memory_space<vmem>>) attributes {dimension_semantics = [#tpu.dimension_semantics<parallel>, #tpu.dimension_semantics<parallel>], iteration_bounds = array<i64: 2, 1>, scalar_prefetch = 0 : i64, scratch_operands = 0 : i64, tpu.core_type = #tpu.core_type<tc>, window_params = [{transform_indices = @transform_0, window_bounds = array<i64: 1, 256, 27>}, {pipeline_mode = #tpu.pipeline_mode<synchronous>, transform_indices = @transform_1, window_bounds = array<i64: 27, 32>}, {pipeline_mode = #tpu.pipeline_mode<synchronous>, transform_indices = @transform_2, window_bounds = array<i64: 1, 32>}, {pipeline_mode = #tpu.pipeline_mode<synchronous>, transform_indices = @transform_3, window_bounds = array<i64: 32, 16>}, {pipeline_mode = #tpu.pipeline_mode<synchronous>, transform_indices = @transform_4, window_bounds = array<i64: 1, 16>}, {pipeline_mode = #tpu.pipeline_mode<synchronous>, transform_indices = @transform_5, window_bounds = array<i64: 16, 128>}, {pipeline_mode = #tpu.pipeline_mode<synchronous>, transform_indices = @transform_6, window_bounds = array<i64: 1, 128>}, {pipeline_mode = #tpu.pipeline_mode<synchronous>, transform_indices = @transform_7, window_bounds = array<i64: 1, 128>}, {transform_indices = @transform_8, window_bounds = array<i64: 1, 256, 128>}, {transform_indices = @transform_9, window_bounds = array<i64: 1, 1, 1, 16>}]} {
    %c0 = arith.constant 0 : index
    %c0_0 = arith.constant 0 : index
    %c0_1 = arith.constant 0 : index
    %0 = vector.load %arg2[%c0, %c0_0, %c0_1] : memref<1x256x27xbf16, #tpu.memory_space<vmem>>, vector<1x256x27xbf16>
    %1 = vector.shape_cast %0 : vector<1x256x27xbf16> to vector<256x27xbf16>
    %c0_2 = arith.constant 0 : index
    %c0_3 = arith.constant 0 : index
    %2 = vector.load %arg3[%c0_2, %c0_3] : memref<27x32xbf16, #tpu.memory_space<vmem>>, vector<27x32xbf16>
    %cst = arith.constant dense<0.000000e+00> : vector<256x32xf32>
    %3 = tpu.matmul %1, %2, %cst {dimension_numbers = #tpu.dot_dimension_numbers<[1], [0], [0], [1], [0, 0, 1, 1], [], []>} : vector<256x27xbf16>, vector<27x32xbf16>, vector<256x32xf32> -> vector<256x32xf32>
    %c0_4 = arith.constant 0 : index
    %c0_5 = arith.constant 0 : index
    %4 = vector.load %arg4[%c0_4, %c0_5] : memref<1x32xf32, #tpu.memory_space<vmem>>, vector<1x32xf32>
    %5 = vector.broadcast %4 : vector<1x32xf32> to vector<256x32xf32>
    %6 = arith.addf %3, %5 : vector<256x32xf32>
    %cst_6 = arith.constant 0.000000e+00 : f32
    %7 = vector.broadcast %cst_6 : f32 to vector<256x32xf32>
    %8 = arith.maximumf %6, %7 : vector<256x32xf32>
    %9 = arith.truncf %8 : vector<256x32xf32> to vector<256x32xbf16>
    %c0_7 = arith.constant 0 : index
    %c0_8 = arith.constant 0 : index
    %10 = vector.load %arg5[%c0_7, %c0_8] : memref<32x16xbf16, #tpu.memory_space<vmem>>, vector<32x16xbf16>
    %cst_9 = arith.constant dense<0.000000e+00> : vector<256x16xf32>
    %11 = tpu.matmul %9, %10, %cst_9 {dimension_numbers = #tpu.dot_dimension_numbers<[1], [0], [0], [1], [0, 0, 1, 1], [], []>} : vector<256x32xbf16>, vector<32x16xbf16>, vector<256x16xf32> -> vector<256x16xf32>
    %c0_10 = arith.constant 0 : index
    %c0_11 = arith.constant 0 : index
    %12 = vector.load %arg6[%c0_10, %c0_11] : memref<1x16xf32, #tpu.memory_space<vmem>>, vector<1x16xf32>
    %13 = vector.broadcast %12 : vector<1x16xf32> to vector<256x16xf32>
    %14 = arith.addf %11, %13 : vector<256x16xf32>
    %15 = arith.truncf %14 : vector<256x16xf32> to vector<256x16xbf16>
    %c0_12 = arith.constant 0 : index
    %c0_13 = arith.constant 0 : index
    %16 = vector.load %arg7[%c0_12, %c0_13] : memref<16x128xbf16, #tpu.memory_space<vmem>>, vector<16x128xbf16>
    %cst_14 = arith.constant dense<0.000000e+00> : vector<256x128xf32>
    %17 = tpu.matmul %15, %16, %cst_14 {dimension_numbers = #tpu.dot_dimension_numbers<[1], [0], [0], [1], [0, 0, 1, 1], [], []>} : vector<256x16xbf16>, vector<16x128xbf16>, vector<256x128xf32> -> vector<256x128xf32>
    %c0_15 = arith.constant 0 : index
    %c0_16 = arith.constant 0 : index
    %18 = vector.load %arg8[%c0_15, %c0_16] : memref<1x128xf32, #tpu.memory_space<vmem>>, vector<1x128xf32>
    %19 = vector.broadcast %18 : vector<1x128xf32> to vector<256x128xf32>
    %20 = arith.addf %17, %19 : vector<256x128xf32>
    %21 = vector.extract_strided_slice %20 {offsets = [0, 5], sizes = [256, 1], strides = [1, 1]} : vector<256x128xf32> to vector<256x1xf32>
    %22 = arith.negf %21 : vector<256x1xf32>
    %23 = math.exp %22 : vector<256x1xf32>
    %cst_17 = arith.constant 1.000000e+00 : f32
    %24 = vector.broadcast %cst_17 : f32 to vector<256x1xf32>
    %25 = arith.addf %24, %23 : vector<256x1xf32>
    %26 = arith.divf %24, %25 : vector<256x1xf32>
    %c0_18 = arith.constant 0 : index
    %c0_19 = arith.constant 0 : index
    %27 = vector.load %arg9[%c0_18, %c0_19] : memref<1x128xf32, #tpu.memory_space<vmem>>, vector<1x128xf32>
    %28 = vector.broadcast %26 : vector<256x1xf32> to vector<256x128xf32>
    %29 = vector.broadcast %27 : vector<1x128xf32> to vector<256x128xf32>
    %30 = arith.mulf %28, %29 : vector<256x128xf32>
    %31 = arith.addf %20, %30 : vector<256x128xf32>
    %32 = tpu.iota {dimensions = array<i32: 1>} : vector<256x128xi32>
    %c5_i32 = arith.constant 5 : i32
    %33 = vector.broadcast %c5_i32 : i32 to vector<256x128xi32>
    %34 = arith.cmpi eq, %32, %33 : vector<256x128xi32>
    %35 = vector.shape_cast %26 : vector<256x1xf32> to vector<256x1xf32>
    %36 = vector.broadcast %35 : vector<256x1xf32> to vector<256x128xf32>
    %37 = arith.select %34, %36, %31 : vector<256x128xi1>, vector<256x128xf32>
    %c0_20 = arith.constant 0 : index
    %c0_21 = arith.constant 0 : index
    %c0_22 = arith.constant 0 : index
    %38 = vector.load %arg10[%c0_20, %c0_21, %c0_22] : memref<1x256x128xf32, #tpu.memory_space<vmem>>, vector<1x256x128xf32>
    %39 = vector.shape_cast %38 : vector<1x256x128xf32> to vector<256x128xf32>
    %40 = vector.shape_cast %37 : vector<256x128xf32> to vector<1x256x128xf32>
    tpu.vector_store %arg10[%c0_20, %c0_21, %c0_22], %40 {strides = array<i32>} : memref<1x256x128xf32, #tpu.memory_space<vmem>>, vector<1x256x128xf32>,
    %41 = tpu.iota {dimensions = array<i32: 0>} : vector<256x16xi32>
    %c256_i32 = arith.constant 256 : i32
    %42 = arith.muli %arg1, %c256_i32 : i32
    %43 = vector.broadcast %42 : i32 to vector<256x16xi32>
    %44 = arith.addi %41, %43 : vector<256x16xi32>
    %c256_i32_23 = arith.constant 256 : i32
    %45 = vector.broadcast %c256_i32_23 : i32 to vector<256x16xi32>
    %46 = arith.cmpi slt, %44, %45 : vector<256x16xi32>
    %cst_24 = arith.constant 0.000000e+00 : f32
    %47 = vector.broadcast %cst_24 : f32 to vector<256x16xf32>
    %48 = arith.select %46, %14, %47 : vector<256x16xi1>, vector<256x16xf32>
    %cst_25 = arith.constant dense<0.000000e+00> : vector<16xf32>
    %49 = vector.multi_reduction <add>, %48, %cst_25 [0] : vector<256x16xf32> to vector<16xf32>
    %50 = vector.shape_cast %49 : vector<16xf32> to vector<1x16xf32>
    %c0_26 = arith.constant 0 : index
    %c0_27 = arith.constant 0 : index
    %c0_28 = arith.constant 0 : index
    %c0_29 = arith.constant 0 : index
    %51 = vector.load %arg11[%c0_26, %c0_27, %c0_28, %c0_29] : memref<1x1x1x16xf32, #tpu.memory_space<vmem>>, vector<1x1x1x16xf32>
    %52 = vector.shape_cast %51 : vector<1x1x1x16xf32> to vector<1x16xf32>
    %53 = vector.shape_cast %50 : vector<1x16xf32> to vector<1x1x1x16xf32>
    tpu.vector_store %arg11[%c0_26, %c0_27, %c0_28, %c0_29], %53 {strides = array<i32>} : memref<1x1x1x16xf32, #tpu.memory_space<vmem>>, vector<1x1x1x16xf32>,
    return
  }
  func.func @transform_0(%arg0: i32, %arg1: i32) -> (i32, i32, i32) {
    %c0_i32 = arith.constant 0 : i32
    %c0_i32_0 = arith.constant 0 : i32
    return %arg0, %arg1, %c0_i32 : i32, i32, i32
  }
  func.func @transform_1(%arg0: i32, %arg1: i32) -> (i32, i32) {
    %c0_i32 = arith.constant 0 : i32
    %c0_i32_0 = arith.constant 0 : i32
    %c0_i32_1 = arith.constant 0 : i32
    return %c0_i32, %c0_i32_0 : i32, i32
  }
  func.func @transform_2(%arg0: i32, %arg1: i32) -> (i32, i32) {
    %c0_i32 = arith.constant 0 : i32
    %c0_i32_0 = arith.constant 0 : i32
    %c0_i32_1 = arith.constant 0 : i32
    return %c0_i32, %c0_i32_0 : i32, i32
  }
  func.func @transform_3(%arg0: i32, %arg1: i32) -> (i32, i32) {
    %c0_i32 = arith.constant 0 : i32
    %c0_i32_0 = arith.constant 0 : i32
    %c0_i32_1 = arith.constant 0 : i32
    return %c0_i32, %c0_i32_0 : i32, i32
  }
  func.func @transform_4(%arg0: i32, %arg1: i32) -> (i32, i32) {
    %c0_i32 = arith.constant 0 : i32
    %c0_i32_0 = arith.constant 0 : i32
    %c0_i32_1 = arith.constant 0 : i32
    return %c0_i32, %c0_i32_0 : i32, i32
  }
  func.func @transform_5(%arg0: i32, %arg1: i32) -> (i32, i32) {
    %c0_i32 = arith.constant 0 : i32
    %c0_i32_0 = arith.constant 0 : i32
    %c0_i32_1 = arith.constant 0 : i32
    return %c0_i32, %c0_i32_0 : i32, i32
  }
  func.func @transform_6(%arg0: i32, %arg1: i32) -> (i32, i32) {
    %c0_i32 = arith.constant 0 : i32
    %c0_i32_0 = arith.constant 0 : i32
    %c0_i32_1 = arith.constant 0 : i32
    return %c0_i32, %c0_i32_0 : i32, i32
  }
  func.func @transform_7(%arg0: i32, %arg1: i32) -> (i32, i32) {
    %c0_i32 = arith.constant 0 : i32
    %c0_i32_0 = arith.constant 0 : i32
    %c0_i32_1 = arith.constant 0 : i32
    return %c0_i32, %c0_i32_0 : i32, i32
  }
  func.func @transform_8(%arg0: i32, %arg1: i32) -> (i32, i32, i32) {
    %c0_i32 = arith.constant 0 : i32
    %c0_i32_0 = arith.constant 0 : i32
    return %arg0, %arg1, %c0_i32 : i32, i32, i32
  }
  func.func @transform_9(%arg0: i32, %arg1: i32) -> (i32, i32, i32, i32) {
    %c0_i32 = arith.constant 0 : i32
    %c0_i32_0 = arith.constant 0 : i32
    %c0_i32_1 = arith.constant 0 : i32
    return %arg0, %arg1, %c0_i32, %c0_i32_0 : i32, i32, i32, i32
  }
}

</mosaic_0001>

<bundles_post_ra>
// kernel: tpu_custom_call.1
= control target key start
LH: loop header
LB: loop body
LE: loop exit
PB: predicated region body
PF: predicated region fallthrough
CT: control target
= control target key end

     0   :  { %s3393_s0 = inlined_call_operand.vmem [shape: bf16[2,256,27], index: 0, kind: input, shape index: {}]   ;;  %s3394_s1 = inlined_call_operand.vmem [shape: bf16[27,32], index: 1, kind: input, shape index: {}]   ;;  %s3395_s2 = inlined_call_operand.vmem [shape: f32[1,32], index: 2, kind: input, shape index: {}]   ;;  %s3396_s3 = inlined_call_operand.vmem [shape: bf16[32,16], index: 3, kind: input, shape index: {}]   ;;  %s3397_s4 = inlined_call_operand.vmem [shape: f32[1,16], index: 4, kind: input, shape index: {}]   ;;  %s3398_s5 = inlined_call_operand.vmem [shape: bf16[16,128], index: 5, kind: input, shape index: {}]   ;;  %s3399_s6 = inlined_call_operand.vmem [shape: f32[1,128], index: 6, kind: input, shape index: {}]   ;;  %s3400_s7 = inlined_call_operand.vmem [shape: f32[1,128], index: 7, kind: input, shape index: {}]   ;;  %s3401_s8 = inlined_call_operand.hbm [shape: f32[2,256,128], index: 8, kind: output, shape index: {0}]   ;;  %s3402_s9 = inlined_call_operand.hbm [shape: f32[2,1,1,16], index: 9, kind: output, shape index: {1}]  }
   0x1   :  { %3403 = sst [smem:[#allocation8_spill]] %s3393_s0 }
   0x2   :  { %15 = vsyncpa [#allocation3], 0 }
   0x3   :  { %17 = vsyncpa [#allocation3 + $0x1], 0 }
   0x4   :  { %18 = vsyncpa [#allocation5], 0 }
   0x5   :  { %20 = vsyncpa [#allocation5 + $0x1], 0  ;;  %s2749_s30 = smov 0   ;;  %s2751_s10 = smov 0  }
   0x6   :  { %s2753_s11 = smov 0   ;;  %s2755_s12 = smov 0  }
   0x7   :  { %s2757_s13 = smov 0   ;;  %s2759_s14 = smov 0  }
   0x8 LB: > { %s2082_s15 = sadd.s32 4294967295, %s2691_s14   ;;  %s2083_s16 = sadd.s32 4294967294, %s2691_s14   ;;  %s2691_s14 = sphi %s2759_s14, %s26_s14   ;;  %s2687_s13 = sphi %s2757_s13, %s3411_s13   ;;  %s2683_s12 = sphi %s2755_s12, %s3410_s12   ;;  %s2679_s11 = sphi %s2753_s11, %s3409_s11   ;;  %s2675_s10 = sphi %s2751_s10, %s3408_s10   ;;  %s2671_s30 = sphi %s2749_s30, %s3407_s30  }
   0x9   : > { %s38_s17 = sadd.s32 1, %s2687_s13  ;;  %s222_s18 = sadd.s32 1, %s2679_s11 }
   0xa   : > { %p40_p0 = scmp.ge.s32.totalorder %s38_s17, 2  ;;  %p232_p1 = scmp.ne.s32.totalorder %s2679_s11, %s2675_s10 }
   0xb   : > { %p233_p2 = scmp.eq.s32.totalorder %s2082_s15, 1  ;;  %p238_p3 = scmp.ne.s32.totalorder %s2675_s10, %s2671_s30 }
   0xc   : > { %s3413_s17 = smov (%p40_p0, %s38_s17), 0  ;;  %p239_p5 = scmp.eq.s32.totalorder %s2083_s16, 1 }
   0xd   : > { %p2789_p4 = por %p233_p2, %p232_p1  ;;  %s217_s20 = ssub.s32 %s2687_s13, %s3413_s17 }
   0xe   : > { %p2086_p6 = scmp.ge.s32.totalorder %s2691_s14, 1  ;;  %p220_p7 = scmp.eq.s32.totalorder %s217_s20, 0 }
   0xf   : > { %p2796_p8 = por %p239_p5, %p238_p3  ;;  %p319_p9 = scmp.lt.s32.totalorder %s2691_s14, 3 }
  0x10   : > { %s2802_s22 = scalar_select %p220_p7, %s2679_s11, %s222_s18  }
  0x11   : > { %p320_p10 = pnand %p2086_p6, %p319_p9 }
  0x12   : > { %v2432_v0 = vld [vmem:[%s3394_s1] sm:$0xff] (!%p320_p10)   ;;  %vm558_vm0 = vcmask (!%p320_p10), 1044480   ;;  %v2433_v1 = vld [vmem:[%s3394_s1 + $0x8] sm:$0x3f] (!%p320_p10)   ;;  %vm559_vm1 = vcmask (!%p320_p10), 1045504   ;;  %p364_p11 = scmp.lt.s32.totalorder (!%p320_p10), %s2683_s12, 1 }
  0x13   : > { %323 = sbr.rel (%p320_p10) target bundleno = 928 (0x3a0), region = 52  ;;  %2256 = vmatprep.subr.bf16.mxu0 (!%p320_p10), %v2432_v0  ;;  %2362 = vmatprep.subr.bf16.mxu1 (!%p320_p10), %v2432_v0  ;;  %v2693_v2 = vmov (!%p320_p10), 65535   ;;  %v2450_v6 = vld [vmem:[%s3396_s3] sm:$0xff] (!%p320_p10)   ;;  %s3406_s0 = sld [smem:[#allocation8_spill]] (!%p320_p10)  ;;  %vm509_vm2 = vcmask (!%p320_p10), 220160   ;;  %v2451_v13 = vld [vmem:[%s3396_s3 + $0x8] sm:$0xff] (!%p320_p10)  }
  0x14   : > { %2257 = vmatpush3.bf16.msra.mxu0 (!%p320_p10), %v2432_v0  ;;  %v560_v3 = vsel (!%p320_p10), %vm558_vm0, 4294967295, %v2693_v2  ;;  %2364 = vmatpush3.bf16.msra.mxu1 (!%p320_p10), %v2432_v0  ;;  %v2452_v24 = vld [vmem:[%s3398_s5] sm:$0xff] (!%p320_p10)   ;;  %vm797_vm3 = vcmask (!%p320_p10), 261120   ;;  %vm1038_vm4 = vcmask (!%p320_p10), 130048   ;;  %s3003_s16 = sand.u32 (!%p320_p10), 1, %s2675_s10   ;;  %vm1938_vm5 = vcmask (!%p320_p10), 122880  }
  0x15   : > { %v561_v4 = vsel (!%p320_p10), %vm559_vm1, %v560_v3, 0  ;;  %v2861_v25 = vld [vmem:[%s3395_s2] ss:$0 sm:$0xff] (!%p320_p10)  ;;  %s362_s18 = scalar_lea.vmem (!%p320_p10), [#allocation4], %s3003_s16  ;;  %s2198_s24 = sshll.u32 (!%p320_p10), %s2683_s12, 4 }
  0x16   : > { %v563_v5 = vand.u32 (!%p320_p10), %v2433_v1, %v561_v4  ;;  %s1977_s25 = sshll.u32 (!%p320_p10), %s362_s18, 4  ;;  %s3147_s28 = scalar_lea.hbm (!%p320_p10), %s3402_s9, %s2198_s24  ;;  %s1978_s25 = int_to_ptr.vmem [resolvable:$true] %s1977_s25 }
  0x17   : > { %s1946_s29 = scalar_lea.sflag (!%p320_p10), [#allocation5], %s3003_s16 }
  0x18   : > { %2258 = vmatprep.subr.bf16.mxu0 (!%p320_p10), %v563_v5  ;;  %2363 = vmatprep.subr.bf16.mxu1 (!%p320_p10), %v563_v5 }
  0x19   : > { %2259 = vmatpush3.bf16.msra.mxu0 (!%p320_p10), %v563_v5  ;;  %2365 = vmatpush3.bf16.msra.mxu1 (!%p320_p10), %v563_v5 }
  0x1a   : > { %s365_s27 = scalar_select %p364_p11, %s2683_s12, 1  ;;  %2292 = vmatprep.subr.bf16.mxu1 %v2450_v6  ;;  %2328 = vmatprep.subr.bf16.mxu0 %v2452_v24 }
  0x1c   : > { %s2201_s15 = sshll.u32 %s365_s27, 7 }
  0x1d   : > { %s2818_s20 = scalar_lea.vmem %s3406_s0, %s2201_s15  ;;  %s2581_s15 = scalar_lea.vmem %s1978_s25, 16 }
  0x1e   : > { %v2434_v7 = vld [vmem:[%s2818_s20] sm:$0xff]   ;;  %v2435_v8 = vld [vmem:[%s2818_s20 + $0x8] sm:$0xff]   ;;  %v2436_v9 = vld [vmem:[%s2818_s20 + $0x10] sm:$0xff]   ;;  %p2582_p12 = scmp.ne.s32.totalorder %s1978_s25, %s2581_s15 }
  0x1f   : > { %2260 = vmatprep.mubr.msk.bf16.mxu0 %vm509_vm2, %v2434_v7  ;;  %v2437_v10 = vld [vmem:[%s2818_s20 + $0x18] sm:$0xff]   ;;  %v2438_v11 = vld [vmem:[%s2818_s20 + $0x20] sm:$0xff]   ;;  %v2443_v14 = vld [vmem:[%s2818_s20 + $0x48] sm:$0xff]  }
  0x20   : > { %2261 = vmatmul.mubr.msk.bf16.vlgmr.msra.gmra.mrb[0].mxu0 %vm509_vm2, %v2435_v8  ;;  %v2442_v12 = vld [vmem:[%s2818_s20 + $0x40] sm:$0xff]   ;;  %v2444_v15 = vld [vmem:[%s2818_s20 + $0x50] sm:$0xff]   ;;  %v2439_v16 = vld [vmem:[%s2818_s20 + $0x28] sm:$0xff]   ;;  %p2583_p13 = pnand %p2582_p12, %p2789_p4 }
  0x21   : > { %2264 = vmatprep.mubr.msk.bf16.mxu0 %vm509_vm2, %v2436_v9  ;;  %2276 = vmatprep.mubr.msk.bf16.mxu1 %vm509_vm2, %v2442_v12  ;;  %v2445_v17 = vld [vmem:[%s2818_s20 + $0x58] sm:$0xff]   ;;  %v2440_v18 = vld [vmem:[%s2818_s20 + $0x30] sm:$0xff]   ;;  %v2446_v19 = vld [vmem:[%s2818_s20 + $0x60] sm:$0xff]  }
  0x22   : > { %2277 = vmatmul.mubr.msk.bf16.vlgmr.msra.gmra.mrb[0].mxu1 %vm509_vm2, %v2443_v14  ;;  %v2441_v20 = vld [vmem:[%s2818_s20 + $0x38] sm:$0xff]   ;;  %v2447_v21 = vld [vmem:[%s2818_s20 + $0x68] sm:$0xff]   ;;  %v2448_v22 = vld [vmem:[%s2818_s20 + $0x70] sm:$0xff]   ;;  %2329 = vmatpush3.bf16.msra.mxu0 %v2452_v24  ;;  %p2584_p0 = pneg %p2583_p13 }
  0x23   : > { %2280 = vmatprep.mubr.msk.bf16.mxu1 %vm509_vm2, %v2444_v15  ;;  %2293 = vmatpush3.bf16.msra.mxu1 %v2450_v6  ;;  %v2449_v23 = vld [vmem:[%s2818_s20 + $0x78] sm:$0xff]   ;;  %s2695_s20 = smov [#allocation4]  }
  0x24   : > { %2294 = vmatprep.subr.bf16.mxu1 %v2451_v13  ;;  %s2585_s23 = sshll.u32 %s2695_s20, 4  ;;  %s2586_s23 = int_to_ptr.vmem [resolvable:$false] %s2585_s23 }
  0x25   : > { %s2587_s0 = scalar_lea.vmem %s2586_s23, 32  ;;  %p2588_p1 = scmp.lt.s32.totalorder %s1978_s25, %s2586_s23 }
  0x26   : > { %p2589_p2 = scmp.lt.s32.totalorder %s2587_s0, %s2581_s15 }
  0x27   : > { %2295 = vmatpush3.bf16.msra.mxu1 %v2451_v13 }
  0x28   : > { %2265 = vmatmul.mubr.msk.bf16.gmra.mrb[4].mxu0 %vm509_vm2, %v2437_v10  ;;  %p2590_p3 = por %p2589_p2, %p2588_p1 }
  0x29   : > { %2268 = vmatprep.mubr.msk.bf16.mxu0 %vm509_vm2, %v2438_v11 }
  0x2a   : > { %2281 = vmatmul.mubr.msk.bf16.gmra.mrb[4].mxu1 %vm509_vm2, %v2445_v17  ;;  %p2591_p5 = pnand %p2590_p3, %p2584_p0 }
  0x2b   : > { %2284 = vmatprep.mubr.msk.bf16.mxu1 %vm509_vm2, %v2446_v19 }
  0x30   : > { %2269 = vmatmul.mubr.msk.bf16.gmra.mrb[8].mxu0 %vm509_vm2, %v2439_v16 }
  0x31   : > { %2272 = vmatprep.mubr.msk.bf16.mxu0 %vm509_vm2, %v2440_v18 }
  0x32   : > { %2285 = vmatmul.mubr.msk.bf16.gmra.mrb[8].mxu1 %vm509_vm2, %v2447_v21 }
  0x33   : > { %2288 = vmatprep.mubr.msk.bf16.mxu1 %vm509_vm2, %v2448_v22 }
  0x38   : > { %2273 = vmatmul.mubr.msk.bf16.gmra.mrb[12].mxu0 %vm509_vm2, %v2441_v20 }
  0x3a   : > { %2289 = vmatmul.mubr.msk.bf16.gmra.mrb[12].mxu1 %vm509_vm2, %v2449_v23 }
  0xf3   : > { %v2262_v26 = vpop.f32.mrb[0].mxu0 }
  0xf4   : > { %v608_v27 = vadd.f32 %v2262_v26, %v2861_v25  ;;  %v599_v28 = vpop.f32.mrb[1].mxu0 }
  0xf5   : > { %v600_v29 = vadd.f32 %v2861_v25, %v599_v28  ;;  %v2263_v30 = vpop.f32.mrb[2].mxu0  ;;  %v2278_v41 = vpop.f32.mrb[0].mxu1 }
  0xf6   : > { %v611_v31 = vadd.f32 %v2263_v30, %v2861_v25  ;;  %v602_v32 = vpop.f32.mrb[3].mxu0  ;;  %v728_v34 = vmax.f32 %v608_v27, 0.0  ;;  %v672_v44 = vadd.f32 %v2278_v41, %v2861_v25  ;;  %v663_v45 = vpop.f32.mrb[1].mxu1 }
  0xf7   : > { %v603_v33 = vadd.f32 %v2861_v25, %v602_v32  ;;  %v726_v36 = vmax.f32 %v600_v29, 0.0  ;;  %v664_v48 = vadd.f32 %v2861_v25, %v663_v45  ;;  %v2279_v49 = vpop.f32.mrb[2].mxu1 }
  0xf8   : > { %v729_v35 = vmax.f32 %v611_v31, 0.0  ;;  %v744_v52 = vmax.f32 %v672_v44, 0.0  ;;  %v675_v53 = vadd.f32 %v2279_v49, %v2861_v25  ;;  %v666_v54 = vpop.f32.mrb[3].mxu1 }
  0xf9   : > { %v727_v37 = vmax.f32 %v603_v33, 0.0  ;;  %v742_v56 = vmax.f32 %v664_v48, 0.0  ;;  %v667_v57 = vadd.f32 %v2861_v25, %v666_v54 }
  0xfa   : > { %v759_v38 = vpack.c.bf16 %v729_v35, %v728_v34  ;;  %v745_v60 = vmax.f32 %v675_v53, 0.0 }
  0xfb   : > { %v758_v39 = vpack.c.bf16 %v727_v37, %v726_v36  ;;  %v2266_v40 = vpop.f32.mrb[4].mxu0  ;;  %v743_v63 = vmax.f32 %v667_v57, 0.0 }
  0xfc   : > { %v624_v42 = vadd.f32 %v2266_v40, %v2861_v25  ;;  %v615_v43 = vpop.f32.mrb[5].mxu0  ;;  %v2877_v1 = vpack.c.bf16 %v745_v60, %v744_v52 }
  0xfd   : > { %v616_v46 = vadd.f32 %v2861_v25, %v615_v43  ;;  %v2267_v47 = vpop.f32.mrb[6].mxu0  ;;  %2296 = vmatprep.mubr.msk.bf16.mxu1 %vm797_vm3, %v758_v39  ;;  %v2879_v4 = vpack.c.bf16 %v743_v63, %v742_v56  ;;  %v2282_v5 = vpop.f32.mrb[4].mxu1 }
  0xfe   : > { %v627_v50 = vadd.f32 %v2267_v47, %v2861_v25  ;;  %v618_v51 = vpop.f32.mrb[7].mxu0  ;;  %2297 = vmatmul.mubr.msk.bf16.vlgmr.msra.gmra.mrb[16].mxu1 %vm797_vm3, %v759_v38  ;;  %v732_v58 = vmax.f32 %v624_v42, 0.0  ;;  %v688_v8 = vadd.f32 %v2282_v5, %v2861_v25  ;;  %v679_v9 = vpop.f32.mrb[5].mxu1 }
  0xff   : > { %v619_v55 = vadd.f32 %v2861_v25, %v618_v51  ;;  %v730_v61 = vmax.f32 %v616_v46, 0.0  ;;  %v680_v12 = vadd.f32 %v2861_v25, %v679_v9  ;;  %v2283_v13 = vpop.f32.mrb[6].mxu1 }
 0x100   : > { %v733_v59 = vmax.f32 %v627_v50, 0.0  ;;  %v748_v16 = vmax.f32 %v688_v8, 0.0  ;;  %v691_v17 = vadd.f32 %v2283_v13, %v2861_v25  ;;  %v682_v18 = vpop.f32.mrb[7].mxu1 }
 0x101   : > { %v731_v62 = vmax.f32 %v619_v55, 0.0  ;;  %v746_v20 = vmax.f32 %v680_v12, 0.0  ;;  %v683_v21 = vadd.f32 %v2861_v25, %v682_v18 }
 0x102   : > { %v761_v0 = vpack.c.bf16 %v733_v59, %v732_v58  ;;  %v749_v24 = vmax.f32 %v691_v17, 0.0 }
 0x103   : > { %v760_v2 = vpack.c.bf16 %v731_v62, %v730_v61  ;;  %v2270_v3 = vpop.f32.mrb[8].mxu0  ;;  %v747_v28 = vmax.f32 %v683_v21, 0.0 }
 0x104   : > { %v640_v6 = vadd.f32 %v2270_v3, %v2861_v25  ;;  %v631_v7 = vpop.f32.mrb[9].mxu0  ;;  %v769_v30 = vpack.c.bf16 %v749_v24, %v748_v16 }
 0x105   : > { %v632_v10 = vadd.f32 %v2861_v25, %v631_v7  ;;  %v2271_v11 = vpop.f32.mrb[10].mxu0  ;;  %2300 = vmatprep.mubr.msk.bf16.mxu1 %vm797_vm3, %v760_v2  ;;  %v768_v33 = vpack.c.bf16 %v747_v28, %v746_v20  ;;  %v2286_v34 = vpop.f32.mrb[8].mxu1 }
 0x106   : > { %v643_v14 = vadd.f32 %v2271_v11, %v2861_v25  ;;  %v634_v15 = vpop.f32.mrb[11].mxu0  ;;  %2301 = vmatmul.mubr.msk.bf16.gmra.mrb[20].mxu1 %vm797_vm3, %v761_v0  ;;  %v736_v22 = vmax.f32 %v640_v6, 0.0  ;;  %v704_v37 = vadd.f32 %v2286_v34, %v2861_v25  ;;  %v695_v38 = vpop.f32.mrb[9].mxu1 }
 0x107   : > { %v635_v19 = vadd.f32 %v2861_v25, %v634_v15  ;;  %v734_v26 = vmax.f32 %v632_v10, 0.0  ;;  %v696_v41 = vadd.f32 %v2861_v25, %v695_v38  ;;  %v2287_v42 = vpop.f32.mrb[10].mxu1 }
 0x108   : > { %v737_v23 = vmax.f32 %v643_v14, 0.0  ;;  %v752_v45 = vmax.f32 %v704_v37, 0.0  ;;  %v707_v46 = vadd.f32 %v2287_v42, %v2861_v25  ;;  %v698_v47 = vpop.f32.mrb[11].mxu1 }
 0x109   : > { %v735_v27 = vmax.f32 %v635_v19, 0.0  ;;  %v750_v49 = vmax.f32 %v696_v41, 0.0  ;;  %v699_v50 = vadd.f32 %v2861_v25, %v698_v47 }
 0x10a   : > { %v763_v29 = vpack.c.bf16 %v737_v23, %v736_v22  ;;  %v753_v53 = vmax.f32 %v707_v46, 0.0 }
 0x10b   : > { %v762_v31 = vpack.c.bf16 %v735_v27, %v734_v26  ;;  %v2274_v32 = vpop.f32.mrb[12].mxu0  ;;  %v751_v56 = vmax.f32 %v699_v50, 0.0 }
 0x10c   : > { %v656_v35 = vadd.f32 %v2274_v32, %v2861_v25  ;;  %v647_v36 = vpop.f32.mrb[13].mxu0  ;;  %v771_v58 = vpack.c.bf16 %v753_v53, %v752_v45 }
 0x10d   : > { %v648_v39 = vadd.f32 %v2861_v25, %v647_v36  ;;  %v2275_v40 = vpop.f32.mrb[14].mxu0  ;;  %2304 = vmatprep.mubr.msk.bf16.mxu1 %vm797_vm3, %v762_v31  ;;  %v770_v60 = vpack.c.bf16 %v751_v56, %v750_v49  ;;  %v2290_v61 = vpop.f32.mrb[12].mxu1 }
 0x10e   : > { %v659_v43 = vadd.f32 %v2275_v40, %v2861_v25  ;;  %v650_v44 = vpop.f32.mrb[15].mxu0  ;;  %2305 = vmatmul.mubr.msk.bf16.gmra.mrb[24].mxu1 %vm797_vm3, %v763_v29  ;;  %v740_v51 = vmax.f32 %v656_v35, 0.0  ;;  %v720_v62 = vadd.f32 %v2290_v61, %v2861_v25  ;;  %v711_v63 = vpop.f32.mrb[13].mxu1 }
 0x10f   : > { %v651_v48 = vadd.f32 %v2861_v25, %v650_v44  ;;  %v738_v54 = vmax.f32 %v648_v39, 0.0  ;;  %v712_v0 = vadd.f32 %v2861_v25, %v711_v63  ;;  %v2291_v2 = vpop.f32.mrb[14].mxu1 }
 0x110   : > { %v741_v52 = vmax.f32 %v659_v43, 0.0  ;;  %v756_v3 = vmax.f32 %v720_v62, 0.0  ;;  %v723_v5 = vadd.f32 %v2291_v2, %v2861_v25  ;;  %v714_v6 = vpop.f32.mrb[15].mxu1 }
 0x111   : > { %v739_v55 = vmax.f32 %v651_v48, 0.0  ;;  %v754_v7 = vmax.f32 %v712_v0, 0.0  ;;  %v715_v8 = vadd.f32 %v2861_v25, %v714_v6  ;;  %v2920_v25 = vld [vmem:[%s3397_s4] ss:$0 sm:$0xff] }
 0x112   : > { %v765_v57 = vpack.c.bf16 %v741_v52, %v740_v51  ;;  %v757_v9 = vmax.f32 %v723_v5, 0.0 }
 0x113   : > { %v764_v59 = vpack.c.bf16 %v739_v55, %v738_v54  ;;  %v755_v10 = vmax.f32 %v715_v8, 0.0 }
 0x114   : > { %v773_v11 = vpack.c.bf16 %v757_v9, %v756_v3 }
 0x115   : > { %2308 = vmatprep.mubr.msk.bf16.mxu1 %vm797_vm3, %v764_v59  ;;  %v772_v12 = vpack.c.bf16 %v755_v10, %v754_v7 }
 0x116   : > { %2309 = vmatmul.mubr.msk.bf16.gmra.mrb[28].mxu1 %vm797_vm3, %v765_v57 }
 0x117   : > { %2312 = vmatprep.mubr.msk.bf16.mxu1 %vm797_vm3, %v2879_v4 }
 0x11e   : > { %2313 = vmatmul.mubr.msk.bf16.gmra.mrb[32].mxu1 %vm797_vm3, %v2877_v1 }
 0x11f   : > { %2316 = vmatprep.mubr.msk.bf16.mxu1 %vm797_vm3, %v768_v33 }
 0x126   : > { %2317 = vmatmul.mubr.msk.bf16.gmra.mrb[36].mxu1 %vm797_vm3, %v769_v30 }
 0x127   : > { %2320 = vmatprep.mubr.msk.bf16.mxu1 %vm797_vm3, %v770_v60 }
 0x12e   : > { %2321 = vmatmul.mubr.msk.bf16.gmra.mrb[40].mxu1 %vm797_vm3, %v771_v58 }
 0x12f   : > { %2324 = vmatprep.mubr.msk.bf16.mxu1 %vm797_vm3, %v772_v12 }
 0x136   : > { %2325 = vmatmul.mubr.msk.bf16.gmra.mrb[44].mxu1 %vm797_vm3, %v773_v11 }
 0x1d1   : > { %v2298_v4 = vpop.f32.mrb[16].mxu1 }
 0x1d2   : > { %v880_v13 = vpop.f32.mrb[17].mxu1  ;;  %v889_v15 = vadd.f32 %v2298_v4, %v2920_v25 }
 0x1d3   : > { %v881_v1 = vadd.f32 %v2920_v25, %v880_v13  ;;  %v2299_v14 = vpop.f32.mrb[18].mxu1 }
 0x1d4   : > { %v892_v16 = vadd.f32 %v2299_v14, %v2920_v25  ;;  %v883_v17 = vpop.f32.mrb[19].mxu1  ;;  %v1872_v24 = vsel %vm1038_vm4, %v889_v15, 0.0 }
 0x1d5   : > { %v884_v18 = vadd.f32 %v2920_v25, %v883_v17  ;;  %v1869_v20 = vsel %vm1038_vm4, %v881_v1, 0.0 }
 0x1d6   : > { %v1008_v19 = vpack.c.bf16 %v892_v16, %v889_v15  ;;  %v1874_v29 = vsel %vm1038_vm4, %v892_v16, 0.0 }
 0x1d7   : > { %v1007_v21 = vpack.c.bf16 %v884_v18, %v881_v1  ;;  %v1870_v22 = vsel %vm1038_vm4, %v884_v18, 0.0 }
 0x1d8   : > { %v1871_v23 = vadd.f32 %v1870_v22, %v1869_v20 }
 0x1d9   : > { %v2302_v26 = vpop.f32.mrb[20].mxu1  ;;  %2330 = vmatprep.mubr.msk.bf16.mxu0 %vm1038_vm4, %v1007_v21 }
 0x1da   : > { %v1873_v27 = vadd.f32 %v1872_v24, %v1871_v23  ;;  %v896_v28 = vpop.f32.mrb[21].mxu1  ;;  %2331 = vmatmul.mubr.msk.bf16.vlgmr.msra.gmra.mrb[16].mxu0 %vm1038_vm4, %v1008_v19  ;;  %v905_v32 = vadd.f32 %v2302_v26, %v2920_v25 }
 0x1db   : > { %v897_v30 = vadd.f32 %v2920_v25, %v896_v28  ;;  %v2303_v31 = vpop.f32.mrb[22].mxu1 }
 0x1dc   : > { %v1875_v33 = vadd.f32 %v1874_v29, %v1873_v27  ;;  %v908_v34 = vadd.f32 %v2303_v31, %v2920_v25  ;;  %v899_v35 = vpop.f32.mrb[23].mxu1  ;;  %v1880_v43 = vsel %vm1038_vm4, %v905_v32, 0.0 }
 0x1dd   : > { %v1876_v36 = vsel %vm1038_vm4, %v897_v30, 0.0  ;;  %v900_v37 = vadd.f32 %v2920_v25, %v899_v35 }
 0x1de   : > { %v1877_v38 = vadd.f32 %v1876_v36, %v1875_v33  ;;  %v1010_v39 = vpack.c.bf16 %v908_v34, %v905_v32  ;;  %v1882_v47 = vsel %vm1038_vm4, %v908_v34, 0.0 }
 0x1df   : > { %v1009_v40 = vpack.c.bf16 %v900_v37, %v897_v30  ;;  %v1878_v41 = vsel %vm1038_vm4, %v900_v37, 0.0 }
 0x1e0   : > { %v1879_v42 = vadd.f32 %v1878_v41, %v1877_v38 }
 0x1e1   : > { %v2306_v44 = vpop.f32.mrb[24].mxu1  ;;  %2334 = vmatprep.mubr.msk.bf16.mxu0 %vm1038_vm4, %v1009_v40 }
 0x1e2   : > { %v1881_v45 = vadd.f32 %v1880_v43, %v1879_v42  ;;  %v912_v46 = vpop.f32.mrb[25].mxu1  ;;  %2335 = vmatmul.mubr.msk.bf16.gmra.mrb[20].mxu0 %vm1038_vm4, %v1010_v39  ;;  %v921_v50 = vadd.f32 %v2306_v44, %v2920_v25 }
 0x1e3   : > { %v913_v48 = vadd.f32 %v2920_v25, %v912_v46  ;;  %v2307_v49 = vpop.f32.mrb[26].mxu1 }
 0x1e4   : > { %v1883_v51 = vadd.f32 %v1882_v47, %v1881_v45  ;;  %v924_v52 = vadd.f32 %v2307_v49, %v2920_v25  ;;  %v915_v53 = vpop.f32.mrb[27].mxu1  ;;  %v1888_v61 = vsel %vm1038_vm4, %v921_v50, 0.0 }
 0x1e5   : > { %v1884_v54 = vsel %vm1038_vm4, %v913_v48, 0.0  ;;  %v916_v55 = vadd.f32 %v2920_v25, %v915_v53 }
 0x1e6   : > { %v1885_v56 = vadd.f32 %v1884_v54, %v1883_v51  ;;  %v1012_v57 = vpack.c.bf16 %v924_v52, %v921_v50  ;;  %v1890_v2 = vsel %vm1038_vm4, %v924_v52, 0.0 }
 0x1e7   : > { %v1011_v58 = vpack.c.bf16 %v916_v55, %v913_v48  ;;  %v1886_v59 = vsel %vm1038_vm4, %v916_v55, 0.0 }
 0x1e8   : > { %v1887_v60 = vadd.f32 %v1886_v59, %v1885_v56 }
 0x1e9   : > { %v2310_v62 = vpop.f32.mrb[28].mxu1  ;;  %2338 = vmatprep.mubr.msk.bf16.mxu0 %vm1038_vm4, %v1011_v58 }
 0x1ea   : > { %v1889_v63 = vadd.f32 %v1888_v61, %v1887_v60  ;;  %v928_v0 = vpop.f32.mrb[29].mxu1  ;;  %2339 = vmatmul.mubr.msk.bf16.gmra.mrb[24].mxu0 %vm1038_vm4, %v1012_v57  ;;  %v937_v6 = vadd.f32 %v2310_v62, %v2920_v25 }
 0x1eb   : > { %v929_v3 = vadd.f32 %v2920_v25, %v928_v0  ;;  %v2311_v5 = vpop.f32.mrb[30].mxu1 }
 0x1ec   : > { %v1891_v7 = vadd.f32 %v1890_v2, %v1889_v63  ;;  %v940_v8 = vadd.f32 %v2311_v5, %v2920_v25  ;;  %v931_v9 = vpop.f32.mrb[31].mxu1  ;;  %v1896_v15 = vsel %vm1038_vm4, %v937_v6, 0.0 }
 0x1ed   : > { %v1892_v10 = vsel %vm1038_vm4, %v929_v3, 0.0  ;;  %v932_v11 = vadd.f32 %v2920_v25, %v931_v9 }
 0x1ee   : > { %v1893_v12 = vadd.f32 %v1892_v10, %v1891_v7  ;;  %v1014_v4 = vpack.c.bf16 %v940_v8, %v937_v6  ;;  %v1898_v19 = vsel %vm1038_vm4, %v940_v8, 0.0 }
 0x1ef   : > { %v1013_v13 = vpack.c.bf16 %v932_v11, %v929_v3  ;;  %v1894_v1 = vsel %vm1038_vm4, %v932_v11, 0.0 }
 0x1f0   : > { %v1895_v14 = vadd.f32 %v1894_v1, %v1893_v12 }
 0x1f1   : > { %v2314_v16 = vpop.f32.mrb[32].mxu1  ;;  %2342 = vmatprep.mubr.msk.bf16.mxu0 %vm1038_vm4, %v1013_v13 }
 0x1f2   : > { %v1897_v17 = vadd.f32 %v1896_v15, %v1895_v14  ;;  %v944_v18 = vpop.f32.mrb[33].mxu1  ;;  %2343 = vmatmul.mubr.msk.bf16.gmra.mrb[28].mxu0 %vm1038_vm4, %v1014_v4  ;;  %v953_v22 = vadd.f32 %v2314_v16, %v2920_v25 }
 0x1f3   : > { %v945_v20 = vadd.f32 %v2920_v25, %v944_v18  ;;  %v2315_v21 = vpop.f32.mrb[34].mxu1 }
 0x1f4   : > { %v1899_v23 = vadd.f32 %v1898_v19, %v1897_v17  ;;  %v956_v24 = vadd.f32 %v2315_v21, %v2920_v25  ;;  %v947_v26 = vpop.f32.mrb[35].mxu1  ;;  %v1904_v34 = vsel %vm1038_vm4, %v953_v22, 0.0 }
 0x1f5   : > { %v1900_v27 = vsel %vm1038_vm4, %v945_v20, 0.0  ;;  %v948_v28 = vadd.f32 %v2920_v25, %v947_v26 }
 0x1f6   : > { %v1901_v29 = vadd.f32 %v1900_v27, %v1899_v23  ;;  %v1016_v30 = vpack.c.bf16 %v956_v24, %v953_v22  ;;  %v1906_v38 = vsel %vm1038_vm4, %v956_v24, 0.0 }
 0x1f7   : > { %v1015_v31 = vpack.c.bf16 %v948_v28, %v945_v20  ;;  %v1902_v32 = vsel %vm1038_vm4, %v948_v28, 0.0 }
 0x1f8   : > { %v1903_v33 = vadd.f32 %v1902_v32, %v1901_v29 }
 0x1f9   : > { %v2318_v35 = vpop.f32.mrb[36].mxu1  ;;  %2346 = vmatprep.mubr.msk.bf16.mxu0 %vm1038_vm4, %v1015_v31 }
 0x1fa   : > { %v1905_v36 = vadd.f32 %v1904_v34, %v1903_v33  ;;  %v960_v37 = vpop.f32.mrb[37].mxu1  ;;  %2347 = vmatmul.mubr.msk.bf16.gmra.mrb[32].mxu0 %vm1038_vm4, %v1016_v30  ;;  %v969_v41 = vadd.f32 %v2318_v35, %v2920_v25  ;;  %v2694_v34 = vmov 5   ;;  %v3011_v35 = vld [vmem:[%s3399_s6] ss:$0 sm:$0xff] }
 0x1fb   : > { %v961_v39 = vadd.f32 %v2920_v25, %v960_v37  ;;  %v2319_v40 = vpop.f32.mrb[38].mxu1  ;;  %2430 = vset.pattern.permute.xlu1 %v2694_v34  ;;  %2431 = vset.pattern.permute.xlu0 %v2694_v34 }
 0x1fc   : > { %v1907_v42 = vadd.f32 %v1906_v38, %v1905_v36  ;;  %v972_v43 = vadd.f32 %v2319_v40, %v2920_v25  ;;  %v963_v44 = vpop.f32.mrb[39].mxu1  ;;  %v1912_v52 = vsel %vm1038_vm4, %v969_v41, 0.0 }
 0x1fd   : > { %v1908_v45 = vsel %vm1038_vm4, %v961_v39, 0.0  ;;  %v964_v46 = vadd.f32 %v2920_v25, %v963_v44 }
 0x1fe   : > { %v1909_v47 = vadd.f32 %v1908_v45, %v1907_v42  ;;  %v1018_v48 = vpack.c.bf16 %v972_v43, %v969_v41  ;;  %v1914_v56 = vsel %vm1038_vm4, %v972_v43, 0.0 }
 0x1ff   : > { %v1017_v49 = vpack.c.bf16 %v964_v46, %v961_v39  ;;  %v1910_v50 = vsel %vm1038_vm4, %v964_v46, 0.0 }
 0x200   : > { %v1911_v51 = vadd.f32 %v1910_v50, %v1909_v47 }
 0x201   : > { %v2322_v53 = vpop.f32.mrb[40].mxu1  ;;  %2350 = vmatprep.mubr.msk.bf16.mxu0 %vm1038_vm4, %v1017_v49 }
 0x202   : > { %v1913_v54 = vadd.f32 %v1912_v52, %v1911_v51  ;;  %v976_v55 = vpop.f32.mrb[41].mxu1  ;;  %2351 = vmatmul.mubr.msk.bf16.gmra.mrb[36].mxu0 %vm1038_vm4, %v1018_v48  ;;  %v985_v59 = vadd.f32 %v2322_v53, %v2920_v25 }
 0x203   : > { %v977_v57 = vadd.f32 %v2920_v25, %v976_v55  ;;  %v2323_v58 = vpop.f32.mrb[42].mxu1 }
 0x204   : > { %v1915_v60 = vadd.f32 %v1914_v56, %v1913_v54  ;;  %v988_v61 = vadd.f32 %v2323_v58, %v2920_v25  ;;  %v979_v62 = vpop.f32.mrb[43].mxu1  ;;  %v1920_v8 = vsel %vm1038_vm4, %v985_v59, 0.0 }
 0x205   : > { %v1916_v63 = vsel %vm1038_vm4, %v977_v57, 0.0  ;;  %v980_v0 = vadd.f32 %v2920_v25, %v979_v62 }
 0x206   : > { %v1917_v2 = vadd.f32 %v1916_v63, %v1915_v60  ;;  %v1020_v3 = vpack.c.bf16 %v988_v61, %v985_v59  ;;  %v1922_v12 = vsel %vm1038_vm4, %v988_v61, 0.0 }
 0x207   : > { %v1019_v5 = vpack.c.bf16 %v980_v0, %v977_v57  ;;  %v1918_v6 = vsel %vm1038_vm4, %v980_v0, 0.0 }
 0x208   : > { %v1919_v7 = vadd.f32 %v1918_v6, %v1917_v2 }
 0x209   : > { %v2326_v9 = vpop.f32.mrb[44].mxu1  ;;  %2354 = vmatprep.mubr.msk.bf16.mxu0 %vm1038_vm4, %v1019_v5 }
 0x20a   : > { %v1921_v10 = vadd.f32 %v1920_v8, %v1919_v7  ;;  %v992_v11 = vpop.f32.mrb[45].mxu1  ;;  %2355 = vmatmul.mubr.msk.bf16.gmra.mrb[40].mxu0 %vm1038_vm4, %v1020_v3  ;;  %v1001_v1 = vadd.f32 %v2326_v9, %v2920_v25 }
 0x20b   : > { %v993_v4 = vadd.f32 %v2920_v25, %v992_v11  ;;  %v2327_v13 = vpop.f32.mrb[46].mxu1 }
 0x20c   : > { %v1923_v14 = vadd.f32 %v1922_v12, %v1921_v10  ;;  %v1004_v15 = vadd.f32 %v2327_v13, %v2920_v25  ;;  %v995_v16 = vpop.f32.mrb[47].mxu1  ;;  %v1928_v24 = vsel %vm1038_vm4, %v1001_v1, 0.0 }
 0x20d   : > { %v1924_v17 = vsel %vm1038_vm4, %v993_v4, 0.0  ;;  %v996_v18 = vadd.f32 %v2920_v25, %v995_v16 }
 0x20e   : > { %v1925_v19 = vadd.f32 %v1924_v17, %v1923_v14  ;;  %v1022_v20 = vpack.c.bf16 %v1004_v15, %v1001_v1  ;;  %v1930_v27 = vsel %vm1038_vm4, %v1004_v15, 0.0 }
 0x20f   : > { %v1021_v21 = vpack.c.bf16 %v996_v18, %v993_v4  ;;  %v1926_v22 = vsel %vm1038_vm4, %v996_v18, 0.0 }
 0x210   : > { %v1927_v23 = vadd.f32 %v1926_v22, %v1925_v19 }
 0x211   : > { %2358 = vmatprep.mubr.msk.bf16.mxu0 %vm1038_vm4, %v1021_v21 }
 0x212   : > { %v1929_v26 = vadd.f32 %v1928_v24, %v1927_v23  ;;  %2359 = vmatmul.mubr.msk.bf16.gmra.mrb[44].mxu0 %vm1038_vm4, %v1022_v20 }
 0x214   : > { %v1931_v28 = vadd.f32 %v1930_v27, %v1929_v26 }
 0x216   : > { %v1932_v29 = vrot.slane %v1931_v28, 4 }
 0x218   : > { %v1933_v30 = vadd.f32 %v1932_v29, %v1931_v28 }
 0x21a   : > { %v1934_v31 = vrot.slane %v1933_v30, 2 }
 0x21c   : > { %v1935_v25 = vadd.f32 %v1934_v31, %v1933_v30 }
 0x21e   : > { %v1936_v32 = vrot.slane %v1935_v25, 1 }
 0x220   : > { %v1937_v33 = vadd.f32 %v1936_v32, %v1935_v25 }
 0x222   : > { %1939 = vst.msk [vmem:[%s362_s18] sm:$0x1] %vm1938_vm5, %v1937_v33 }
 0x2ad   : > { %v2332_v36 = vpop.f32.mrb[16].mxu0 }
 0x2ae   : > { %v3014_v37 = vadd.f32 %v2332_v36, %v3011_v35  ;;  %v1121_v38 = vpop.f32.mrb[17].mxu0 }
 0x2af   : > { %v3017_v39 = vadd.f32 %v3011_v35, %v1121_v38  ;;  %v2333_v40 = vpop.f32.mrb[18].mxu0 }
 0x2b0   : > { %v2164_v41 = vmul.f32 -1.442695, %v3014_v37  ;;  %v3021_v42 = vadd.f32 %v2333_v40, %v3011_v35  ;;  %v1124_v43 = vpop.f32.mrb[19].mxu0 }
 0x2b1   : > { %v2162_v44 = vmul.f32 -1.442695, %v3017_v39  ;;  %v3025_v45 = vadd.f32 %v3011_v35, %v1124_v43 }
 0x2b2   : > { %2453 = vpow2.f32 %v2164_v41  ;;  %v2165_v46 = vmul.f32 -1.442695, %v3021_v42 }
 0x2b3   : > { %2455 = vpow2.f32 %v2162_v44  ;;  %v2163_v47 = vmul.f32 -1.442695, %v3025_v45 }
 0x2b4   : > { %2457 = vpow2.f32 %v2165_v46 }
 0x2b5   : > { %2459 = vpow2.f32 %v2163_v47  ;;  %v2336_v48 = vpop.f32.mrb[20].mxu0 }
 0x2b6   : > { %v3030_v49 = vadd.f32 %v2336_v48, %v3011_v35  ;;  %v1137_v50 = vpop.f32.mrb[21].mxu0 }
 0x2b7   : > { %v3033_v51 = vadd.f32 %v3011_v35, %v1137_v50  ;;  %v2337_v52 = vpop.f32.mrb[22].mxu0 }
 0x2b8   : > { %v2168_v53 = vmul.f32 -1.442695, %v3030_v49  ;;  %v3037_v54 = vadd.f32 %v2337_v52, %v3011_v35  ;;  %v1140_v55 = vpop.f32.mrb[23].mxu0 }
 0x2b9   : > { %v2166_v56 = vmul.f32 -1.442695, %v3033_v51  ;;  %v3041_v57 = vadd.f32 %v3011_v35, %v1140_v55 }
 0x2ba   : > { %2461 = vpow2.f32 %v2168_v53  ;;  %v2169_v58 = vmul.f32 -1.442695, %v3037_v54 }
 0x2bb   : > { %2463 = vpow2.f32 %v2166_v56  ;;  %v2167_v59 = vmul.f32 -1.442695, %v3041_v57 }
 0x2bc   : > { %v2454_v60 = vpop.eup %2453  ;;  %2465 = vpow2.f32 %v2169_v58 }
 0x2bd   : > { %v2456_v61 = vpop.eup %2455  ;;  %v1346_v62 = vadd.f32 1.0, %v2454_v60  ;;  %2467 = vpow2.f32 %v2167_v59  ;;  %v2340_v63 = vpop.f32.mrb[24].mxu0 }
 0x2be   : > { %v2458_v0 = vpop.eup %2457  ;;  %v1344_v2 = vadd.f32 1.0, %v2456_v61  ;;  %v3046_v3 = vadd.f32 %v2340_v63, %v3011_v35  ;;  %v1153_v5 = vpop.f32.mrb[25].mxu0 }
 0x2bf   : > { %v2460_v6 = vpop.eup %2459  ;;  %2469 = vrcp.f32 %v1346_v62  ;;  %v1347_v7 = vadd.f32 1.0, %v2458_v0  ;;  %v3049_v8 = vadd.f32 %v3011_v35, %v1153_v5  ;;  %v2341_v9 = vpop.f32.mrb[26].mxu0 }
 0x2c0   : > { %2471 = vrcp.f32 %v1344_v2  ;;  %v1345_v10 = vadd.f32 1.0, %v2460_v6  ;;  %v2172_v11 = vmul.f32 -1.442695, %v3046_v3  ;;  %v3053_v12 = vadd.f32 %v2341_v9, %v3011_v35  ;;  %v1156_v4 = vpop.f32.mrb[27].mxu0 }
 0x2c1   : > { %2473 = vrcp.f32 %v1347_v7  ;;  %v2170_v13 = vmul.f32 -1.442695, %v3049_v8  ;;  %v3057_v1 = vadd.f32 %v3011_v35, %v1156_v4 }
 0x2c2   : > { %2475 = vrcp.f32 %v1345_v10  ;;  %v2173_v14 = vmul.f32 -1.442695, %v3053_v12 }
 0x2c3   : > { %2477 = vpow2.f32 %v2172_v11  ;;  %v2171_v15 = vmul.f32 -1.442695, %v3057_v1 }
 0x2c4   : > { %v2462_v16 = vpop.eup %2461  ;;  %2479 = vpow2.f32 %v2170_v13 }
 0x2c5   : > { %v2464_v17 = vpop.eup %2463  ;;  %v1350_v18 = vadd.f32 1.0, %v2462_v16  ;;  %2481 = vpow2.f32 %v2173_v14  ;;  %v2344_v19 = vpop.f32.mrb[28].mxu0 }
 0x2c6   : > { %v2466_v20 = vpop.eup %2465  ;;  %v1348_v21 = vadd.f32 1.0, %v2464_v17  ;;  %2483 = vpow2.f32 %v2171_v15  ;;  %v3062_v22 = vadd.f32 %v2344_v19, %v3011_v35  ;;  %v1169_v23 = vpop.f32.mrb[29].mxu0 }
 0x2c7   : > { %v2468_v24 = vpop.eup %2467  ;;  %2485 = vrcp.f32 %v1350_v18  ;;  %v1351_v26 = vadd.f32 1.0, %v2466_v20  ;;  %v3065_v27 = vadd.f32 %v3011_v35, %v1169_v23  ;;  %v2345_v28 = vpop.f32.mrb[30].mxu0 }
 0x2c8   : > { %2487 = vrcp.f32 %v1348_v21  ;;  %v1349_v29 = vadd.f32 1.0, %v2468_v24  ;;  %v2176_v30 = vmul.f32 -1.442695, %v3062_v22  ;;  %v3069_v31 = vadd.f32 %v2345_v28, %v3011_v35  ;;  %v1172_v25 = vpop.f32.mrb[31].mxu0 }
 0x2c9   : > { %v2470_v32 = vpop.eup %2469  ;;  %2489 = vrcp.f32 %v1351_v26  ;;  %v2174_v33 = vmul.f32 -1.442695, %v3065_v27  ;;  %v3073_v34 = vadd.f32 %v3011_v35, %v1172_v25 }
 0x2ca   : > { %v2472_v36 = vpop.eup %2471  ;;  %2491 = vrcp.f32 %v1349_v29  ;;  %v2177_v38 = vmul.f32 -1.442695, %v3069_v31  ;;  %1453 = vperm.xlu1 %2430, %v2470_v32  }
 0x2cb   : > { %v2474_v40 = vpop.eup %2473  ;;  %2493 = vpow2.f32 %v2176_v30  ;;  %v2175_v41 = vmul.f32 -1.442695, %v3073_v34  ;;  %1443 = vperm.xlu0 %2431, %v2472_v36  }
 0x2cc   : > { %v2476_v43 = vpop.eup %2475  ;;  %2495 = vpow2.f32 %v2174_v33 }
 0x2cd   : > { %v2478_v44 = vpop.eup %2477  ;;  %2497 = vpow2.f32 %v2177_v38  ;;  %v2348_v46 = vpop.f32.mrb[32].mxu0 }
 0x2ce   : > { %v2480_v47 = vpop.eup %2479  ;;  %v1354_v48 = vadd.f32 1.0, %v2478_v44  ;;  %2499 = vpow2.f32 %v2175_v41  ;;  %v3078_v50 = vadd.f32 %v2348_v46, %v3011_v35  ;;  %1458 = vperm.xlu1 %2430, %v2474_v40   ;;  %v1185_v52 = vpop.f32.mrb[33].mxu0 }
 0x2cf   : > { %v2482_v53 = vpop.eup %2481  ;;  %v1352_v55 = vadd.f32 1.0, %v2480_v47  ;;  %v3081_v56 = vadd.f32 %v3011_v35, %v1185_v52  ;;  %v2349_v58 = vpop.f32.mrb[34].mxu0  ;;  %1448 = vperm.xlu0 %2431, %v2476_v43  }
 0x2d0   : > { %v2484_v59 = vpop.eup %2483  ;;  %2501 = vrcp.f32 %v1354_v48  ;;  %v1355_v60 = vadd.f32 1.0, %v2482_v53  ;;  %v2180_v61 = vmul.f32 -1.442695, %v3078_v50  ;;  %v3085_v62 = vadd.f32 %v2349_v58, %v3011_v35  ;;  %v1188_v63 = vpop.f32.mrb[35].mxu0 }
 0x2d1   : > { %v2486_v0 = vpop.eup %2485  ;;  %2503 = vrcp.f32 %v1352_v55  ;;  %v1353_v2 = vadd.f32 1.0, %v2484_v59  ;;  %v2178_v5 = vmul.f32 -1.442695, %v3081_v56  ;;  %v3089_v6 = vadd.f32 %v3011_v35, %v1188_v63 }
 0x2d2   : > { %v2488_v7 = vpop.eup %2487  ;;  %2505 = vrcp.f32 %v1355_v60  ;;  %v2181_v9 = vmul.f32 -1.442695, %v3085_v62 }
 0x2d3   : > { %v2490_v10 = vpop.eup %2489  ;;  %2507 = vrcp.f32 %v1353_v2  ;;  %v2179_v11 = vmul.f32 -1.442695, %v3089_v6  ;;  %1473 = vperm.xlu0 %2431, %v2486_v0  }
 0x2d4   : > { %v2492_v4 = vpop.eup %2491  ;;  %2509 = vpow2.f32 %v2180_v61  ;;  %1478 = vperm.xlu1 %2430, %v2490_v10  }
 0x2d5   : > { %v2494_v13 = vpop.eup %2493  ;;  %2511 = vpow2.f32 %v2178_v5  ;;  %v2352_v14 = vpop.f32.mrb[36].mxu0 }
 0x2d6   : > { %v2496_v15 = vpop.eup %2495  ;;  %v1358_v16 = vadd.f32 1.0, %v2494_v13  ;;  %2513 = vpow2.f32 %v2181_v9  ;;  %v3094_v17 = vadd.f32 %v2352_v14, %v3011_v35  ;;  %v1201_v18 = vpop.f32.mrb[37].mxu0 }
 0x2d7   : > { %v2498_v19 = vpop.eup %2497  ;;  %v1356_v20 = vadd.f32 1.0, %v2496_v15  ;;  %2515 = vpow2.f32 %v2179_v11  ;;  %v3097_v21 = vadd.f32 %v3011_v35, %v1201_v18  ;;  %v2353_v23 = vpop.f32.mrb[38].mxu0  ;;  %1463 = vperm.xlu0 %2431, %v2488_v7  }
 0x2d8   : > { %v2500_v24 = vpop.eup %2499  ;;  %2517 = vrcp.f32 %v1358_v16  ;;  %v1359_v26 = vadd.f32 1.0, %v2498_v19  ;;  %v2184_v28 = vmul.f32 -1.442695, %v3094_v17  ;;  %v3101_v29 = vadd.f32 %v2353_v23, %v3011_v35  ;;  %v1204_v30 = vpop.f32.mrb[39].mxu0  ;;  %1468 = vperm.xlu1 %2430, %v2492_v4  }
 0x2d9   : > { %2519 = vrcp.f32 %v1356_v20  ;;  %v1357_v25 = vadd.f32 1.0, %v2500_v24  ;;  %v2182_v32 = vmul.f32 -1.442695, %v3097_v21  ;;  %v3105_v33 = vadd.f32 %v3011_v35, %v1204_v30 }
 0x2da   : > { %v2502_v36 = vpop.eup %2501  ;;  %2521 = vrcp.f32 %v1359_v26  ;;  %v2185_v38 = vmul.f32 -1.442695, %v3101_v29 }
 0x2db   : > { %v2504_v40 = vpop.eup %2503  ;;  %2523 = vrcp.f32 %v1357_v25  ;;  %v2183_v41 = vmul.f32 -1.442695, %v3105_v33  ;;  %1493 = vperm.xlu0 %2431, %v2502_v36  }
 0x2dc   : > { %v2506_v43 = vpop.eup %2505  ;;  %2525 = vpow2.f32 %v2184_v28 }
 0x2dd   : > { %v2508_v44 = vpop.eup %2507  ;;  %2527 = vpow2.f32 %v2182_v32  ;;  %1498 = vperm.xlu1 %2430, %v2506_v43   ;;  %v2356_v46 = vpop.f32.mrb[40].mxu0 }
 0x2de   : > { %v2510_v47 = vpop.eup %2509  ;;  %2529 = vpow2.f32 %v2185_v38  ;;  %v3110_v48 = vadd.f32 %v2356_v46, %v3011_v35  ;;  %v1217_v52 = vpop.f32.mrb[41].mxu0 }
 0x2df   : > { %v2512_v53 = vpop.eup %2511  ;;  %v1362_v55 = vadd.f32 1.0, %v2510_v47  ;;  %2531 = vpow2.f32 %v2183_v41  ;;  %v3113_v58 = vadd.f32 %v3011_v35, %v1217_v52  ;;  %v2357_v59 = vpop.f32.mrb[42].mxu0  ;;  %1483 = vperm.xlu0 %2431, %v2504_v40  }
 0x2e0   : > { %v2514_v60 = vpop.eup %2513  ;;  %v1360_v61 = vadd.f32 1.0, %v2512_v53  ;;  %v3116_v63 = vadd.f32 %v2357_v59, %v3011_v35  ;;  %v1220_v0 = vpop.f32.mrb[43].mxu0  ;;  %v2188_v7 = vmul.f32 -1.442695, %v3110_v48 }
 0x2e1   : > { %v2516_v2 = vpop.eup %2515  ;;  %2533 = vrcp.f32 %v1362_v55  ;;  %v1363_v5 = vadd.f32 1.0, %v2514_v60  ;;  %v3120_v9 = vadd.f32 %v3011_v35, %v1220_v0  ;;  %1488 = vperm.xlu1 %2430, %v2508_v44   ;;  %v2186_v4 = vmul.f32 -1.442695, %v3113_v58 }
 0x2e2   : > { %v2518_v10 = vpop.eup %2517  ;;  %2535 = vrcp.f32 %v1360_v61  ;;  %v1361_v11 = vadd.f32 1.0, %v2516_v2  ;;  %v2189_v14 = vmul.f32 -1.442695, %v3116_v63 }
 0x2e3   : > { %v2520_v13 = vpop.eup %2519  ;;  %2537 = vrcp.f32 %v1363_v5  ;;  %1513 = vperm.xlu0 %2431, %v2518_v10   ;;  %v2187_v16 = vmul.f32 -1.442695, %v3120_v9 }
 0x2e4   : > { %v2522_v15 = vpop.eup %2521  ;;  %2539 = vrcp.f32 %v1361_v11 }
 0x2e5   : > { %v2524_v18 = vpop.eup %2523  ;;  %2541 = vpow2.f32 %v2188_v7  ;;  %1518 = vperm.xlu1 %2430, %v2522_v15   ;;  %v2360_v19 = vpop.f32.mrb[44].mxu0 }
 0x2e6   : > { %v2526_v20 = vpop.eup %2525  ;;  %2543 = vpow2.f32 %v2186_v4  ;;  %v3126_v23 = vadd.f32 %v2360_v19, %v3011_v35  ;;  %v1233_v24 = vpop.f32.mrb[45].mxu0 }
 0x2e7   : > { %v2528_v26 = vpop.eup %2527  ;;  %v1366_v28 = vadd.f32 1.0, %v2526_v20  ;;  %2545 = vpow2.f32 %v2189_v14  ;;  %v3129_v30 = vadd.f32 %v3011_v35, %v1233_v24  ;;  %v2361_v25 = vpop.f32.mrb[46].mxu0  ;;  %1503 = vperm.xlu0 %2431, %v2520_v13  }
 0x2e8   : > { %v2530_v32 = vpop.eup %2529  ;;  %v1364_v36 = vadd.f32 1.0, %v2528_v26  ;;  %2547 = vpow2.f32 %v2187_v16  ;;  %v3132_v38 = vadd.f32 %v2361_v25, %v3011_v35  ;;  %v1236_v40 = vpop.f32.mrb[47].mxu0  ;;  %v2192_v44 = vmul.f32 -1.442695, %v3126_v23 }
 0x2e9   : > { %v2532_v41 = vpop.eup %2531  ;;  %2549 = vrcp.f32 %v1366_v28  ;;  %v1367_v43 = vadd.f32 1.0, %v2530_v32  ;;  %v3136_v46 = vadd.f32 %v3011_v35, %v1236_v40  ;;  %1508 = vperm.xlu1 %2430, %v2524_v18   ;;  %v2190_v52 = vmul.f32 -1.442695, %v3129_v30 }
 0x2ea   : > { %2551 = vrcp.f32 %v1364_v36  ;;  %v1365_v47 = vadd.f32 1.0, %v2532_v41  ;;  %v2193_v55 = vmul.f32 -1.442695, %v3132_v38 }
 0x2eb   : > { %v2534_v53 = vpop.eup %2533  ;;  %2553 = vrcp.f32 %v1367_v43  ;;  %v2191_v60 = vmul.f32 -1.442695, %v3136_v46 }
 0x2ec   : > { %v2536_v59 = vpop.eup %2535  ;;  %2555 = vrcp.f32 %v1365_v47  ;;  %1533 = vperm.xlu0 %2431, %v2534_v53  }
 0x2ed   : > { %v2538_v61 = vpop.eup %2537  ;;  %2557 = vpow2.f32 %v2192_v44 }
 0x2ee   : > { %v2540_v0 = vpop.eup %2539  ;;  %2559 = vpow2.f32 %v2190_v52  ;;  %1538 = vperm.xlu1 %2430, %v2538_v61  }
 0x2ef   : > { %v2542_v35 = vpop.eup %2541  ;;  %2561 = vpow2.f32 %v2193_v55 }
 0x2f0   : > { %v2544_v2 = vpop.eup %2543  ;;  %v1370_v5 = vadd.f32 1.0, %v2542_v35  ;;  %2563 = vpow2.f32 %v2191_v60  ;;  %1523 = vperm.xlu0 %2431, %v2536_v59  }
 0x2f1   : > { %v2546_v7 = vpop.eup %2545  ;;  %v1368_v11 = vadd.f32 1.0, %v2544_v2 }
 0x2f2   : > { %v2548_v10 = vpop.eup %2547  ;;  %2565 = vrcp.f32 %v1370_v5  ;;  %v1371_v4 = vadd.f32 1.0, %v2546_v7  ;;  %1528 = vperm.xlu1 %2430, %v2540_v0  }
 0x2f3   : > { %v2550_v13 = vpop.eup %2549  ;;  %v1369_v15 = vadd.f32 1.0, %v2548_v10 }
 0x2f4   : > { %v2552_v14 = vpop.eup %2551  ;;  %2567 = vrcp.f32 %v1371_v4  ;;  %1553 = vperm.xlu0 %2431, %v2550_v13  }
 0x2f5   : > { %v2554_v16 = vpop.eup %2553  ;;  %2569 = vrcp.f32 %v1368_v11 }
 0x2f6   : > { %v2556_v18 = vpop.eup %2555  ;;  %1558 = vperm.xlu1 %2430, %v2554_v16   ;;  %2571 = vrcp.f32 %v1369_v15 }
 0x2f7   : > { %v2558_v19 = vpop.eup %2557 }
 0x2f8   : > { %v2560_v20 = vpop.eup %2559  ;;  %1543 = vperm.xlu0 %2431, %v2552_v14   ;;  %v1374_v25 = vadd.f32 1.0, %v2558_v19 }
 0x2f9   : > { %v2562_v24 = vpop.eup %2561  ;;  %v1372_v26 = vadd.f32 1.0, %v2560_v20 }
 0x2fa   : > { %v2564_v28 = vpop.eup %2563  ;;  %1548 = vperm.xlu1 %2430, %v2556_v18   ;;  %v1375_v40 = vadd.f32 1.0, %v2562_v24 }
 0x2fb   : > { %2573 = vrcp.f32 %v1372_v26  ;;  %v1373_v32 = vadd.f32 1.0, %v2564_v28 }
 0x2fc   : > { %v2566_v36 = vpop.eup %2565 }
 0x2fd   : > { %2575 = vrcp.f32 %v1373_v32  ;;  %1573 = vperm.xlu0 %2431, %v2566_v36  }
 0x2fe   : > { %v2568_v41 = vpop.eup %2567  ;;  %2577 = vrcp.f32 %v1374_v25 }
 0x2ff   : > { %1578 = vperm.xlu1 %2430, %v2568_v41   ;;  %v2570_v43 = vpop.eup %2569  ;;  %2579 = vrcp.f32 %v1375_v40 }
 0x300   : > { %v2572_v44 = vpop.eup %2571 }
 0x301   : > { %1563 = vperm.xlu0 %2431, %v2570_v43  }
 0x303   : > { %1568 = vperm.xlu1 %2430, %v2572_v44  }
 0x305   : > { %v2574_v47 = vpop.eup %2573 }
 0x306   : > { %1583 = vperm.xlu0 %2431, %v2574_v47  }
 0x307   : > { %v2576_v52 = vpop.eup %2575 }
 0x308   : > { %1588 = vperm.xlu1 %2430, %v2576_v52   ;;  %v2578_v53 = vpop.eup %2577 }
 0x309   : > { %v2580_v55 = vpop.eup %2579 }
 0x30a   : > { %1593 = vperm.xlu0 %2431, %v2578_v53  }
 0x30c   : > { %1598 = vperm.xlu1 %2430, %v2580_v55  }
 0x30d   : > { %2594 = shalt.err (!%p2591_p5)
}
 0x30e   : > { %s2595_s18 = scalar_lea.hbm %s3147_s28, 16  ;;  %s2599_s27 = scalar_lea.hbm %s3402_s9, 32 }
 0x30f   : > { %p2596_p6 = scmp.ne.s32.totalorder %s3147_s28, %s2595_s18  ;;  %p2600_p10 = scmp.lt.u32.totalorder %s3147_s28, %s3402_s9 }
 0x310   : > { %p2601_p11 = scmp.lt.u32.totalorder %s2599_s27, %s2595_s18  ;;  %p2603_p13 = scmp.lt.u32.totalorder %s2595_s18, %s3147_s28 }
 0x311   : > { %p2597_p7 = pnand %p2596_p6, %p2789_p4 }
 0x312   : > { %p2602_p12 = por %p2601_p11, %p2600_p10 }
 0x313   : > { %p2598_p9 = pneg %p2597_p7 }
 0x314   : > { %p2604_p0 = por %p2603_p13, %p2602_p12 }
 0x316   : > { %p2605_p1 = pnand %p2604_p0, %p2598_p9 }
 0x318   : > { %2608 = shalt.err (!%p2605_p1)
}
 0x319   : > { %2367 = dma.vmem_to_hbm [thread:$0]  (%p2789_p4), %s1978_s25, 16, %s3147_s28, %s1946_s29   ;;  %v1671_v59 = vlaneseq  ;;  %v3170_v60 = vld [vmem:[%s3400_s7] ss:$0 sm:$0xff] }
 0x31a   : > { %s2087_s24 = sshll.u32 %s3003_s16, 8  ;;  %s2202_s28 = sshll.u32 %s2683_s12, 12 }
 0x31b   : > { %v3172_v61 = vand.u32 127, %v1671_v59  ;;  %s3183_s25 = scalar_lea.vmem [#allocation2], %s2087_s24  ;;  %s3339_s27 = scalar_lea.hbm %s3401_s8, %s2202_s28 }
 0x31c   : > { %s1960_s29 = sshll.u32 %s3183_s25, 4  ;;  %s1941_s12 = scalar_lea.sflag [#allocation3], %s3003_s16  ;;  %s3341_s29 = int_to_ptr.vmem [resolvable:$true] %s1960_s29 }
 0x31d   : > { %vm1673_vm6 = vcmp.eq.s32.totalorder %v3172_v61, 5  ;;  %s2609_s20 = scalar_lea.vmem %s3341_s29, 4096  ;;  %s2696_s23 = smov [#allocation2]  }
 0x31e   : > { %p2610_p2 = scmp.ne.s32.totalorder %s3341_s29, %s2609_s20  ;;  %s2613_s0 = sshll.u32 %s2696_s23, 4  ;;  %s2614_s0 = int_to_ptr.vmem [resolvable:$false] %s2613_s0 }
 0x31f   : > { %s2615_s15 = scalar_lea.vmem %s2614_s0, 8192  ;;  %p2616_p6 = scmp.lt.s32.totalorder %s3341_s29, %s2614_s0 }
 0x320   : > { %p2611_p3 = pnand %p2610_p2, %p2789_p4  ;;  %p2617_p7 = scmp.lt.s32.totalorder %s2615_s15, %s2609_s20 }
 0x322   : > { %p2612_p5 = pneg %p2611_p3  ;;  %p2618_p9 = por %p2617_p7, %p2616_p6 }
 0x324   : > { %p2619_p10 = pnand %p2618_p9, %p2612_p5 }
 0x349   : > { %v1454_v0 = vpop.permute.xlu1 %1453 }
 0x34a   : > { %v1609_v35 = vmul.f32 %v3170_v60, %v1454_v0  ;;  %v1444_v2 = vpop.permute.xlu0 %1443 }
 0x34b   : > { %v1607_v5 = vmul.f32 %v3170_v60, %v1444_v2 }
 0x34c   : > { %v1641_v7 = vadd.f32 %v1609_v35, %v3014_v37 }
 0x34d   : > { %v1639_v10 = vadd.f32 %v1607_v5, %v3017_v39  ;;  %v1459_v11 = vpop.permute.xlu1 %1458 }
 0x34e   : > { %v1676_v4 = vsel %vm1673_vm6, %v1454_v0, %v1641_v7  ;;  %v1610_v13 = vmul.f32 %v3170_v60, %v1459_v11  ;;  %v1449_v14 = vpop.permute.xlu0 %1448 }
 0x34f   : > { %1708 = vst [vmem:[%s3183_s25 + $0x10] sm:$0xff] %v1676_v4  ;;  %v1674_v15 = vsel %vm1673_vm6, %v1444_v2, %v1639_v10  ;;  %v1608_v37 = vmul.f32 %v3170_v60, %v1449_v14 }
 0x350   : > { %1706 = vst [vmem:[%s3183_s25] sm:$0xff] %v1674_v15  ;;  %v1642_v39 = vadd.f32 %v1610_v13, %v3021_v42 }
 0x351   : > { %v1640_v16 = vadd.f32 %v1608_v37, %v3025_v45 }
 0x352   : > { %v1677_v18 = vsel %vm1673_vm6, %v1459_v11, %v1642_v39  ;;  %v1474_v19 = vpop.permute.xlu0 %1473 }
 0x353   : > { %1709 = vst [vmem:[%s3183_s25 + $0x18] sm:$0xff] %v1677_v18  ;;  %v1675_v20 = vsel %vm1673_vm6, %v1449_v14, %v1640_v16  ;;  %v1613_v24 = vmul.f32 %v3170_v60, %v1474_v19  ;;  %v1479_v26 = vpop.permute.xlu1 %1478 }
 0x354   : > { %1707 = vst [vmem:[%s3183_s25 + $0x8] sm:$0xff] %v1675_v20  ;;  %v1614_v28 = vmul.f32 %v3170_v60, %v1479_v26 }
 0x355   : > { %v1645_v42 = vadd.f32 %v1613_v24, %v3030_v49 }
 0x356   : > { %v1646_v45 = vadd.f32 %v1614_v28, %v3037_v54  ;;  %v1464_v25 = vpop.permute.xlu0 %1463 }
 0x357   : > { %v1680_v32 = vsel %vm1673_vm6, %v1474_v19, %v1645_v42  ;;  %v1611_v36 = vmul.f32 %v3170_v60, %v1464_v25  ;;  %v1469_v40 = vpop.permute.xlu1 %1468 }
 0x358   : > { %1712 = vst [vmem:[%s3183_s25 + $0x30] sm:$0xff] %v1680_v32  ;;  %v1681_v41 = vsel %vm1673_vm6, %v1479_v26, %v1646_v45  ;;  %v1612_v43 = vmul.f32 %v3170_v60, %v1469_v40 }
 0x359   : > { %1713 = vst [vmem:[%s3183_s25 + $0x38] sm:$0xff] %v1681_v41  ;;  %v1643_v49 = vadd.f32 %v1611_v36, %v3033_v51 }
 0x35a   : > { %v1644_v54 = vadd.f32 %v1612_v43, %v3041_v57  ;;  %v1494_v44 = vpop.permute.xlu0 %1493 }
 0x35b   : > { %v1678_v47 = vsel %vm1673_vm6, %v1464_v25, %v1643_v49  ;;  %v1617_v52 = vmul.f32 %v3170_v60, %v1494_v44 }
 0x35c   : > { %1710 = vst [vmem:[%s3183_s25 + $0x20] sm:$0xff] %v1678_v47  ;;  %v1679_v53 = vsel %vm1673_vm6, %v1469_v40, %v1644_v54  ;;  %v1499_v55 = vpop.permute.xlu1 %1498 }
 0x35d   : > { %1711 = vst [vmem:[%s3183_s25 + $0x28] sm:$0xff] %v1679_v53  ;;  %v1649_v59 = vadd.f32 %v1617_v52, %v3046_v3  ;;  %v1618_v51 = vmul.f32 %v3170_v60, %v1499_v55 }
 0x35e   : > { %v1484_v0 = vpop.permute.xlu0 %1483 }
 0x35f   : > { %v1684_v57 = vsel %vm1673_vm6, %v1494_v44, %v1649_v59  ;;  %v1650_v35 = vadd.f32 %v1618_v51, %v3053_v12  ;;  %v1615_v2 = vmul.f32 %v3170_v60, %v1484_v0 }
 0x360   : > { %1716 = vst [vmem:[%s3183_s25 + $0x50] sm:$0xff] %v1684_v57  ;;  %v1489_v5 = vpop.permute.xlu1 %1488 }
 0x361   : > { %v1685_v7 = vsel %vm1673_vm6, %v1499_v55, %v1650_v35  ;;  %v1647_v10 = vadd.f32 %v1615_v2, %v3049_v8  ;;  %v1616_v3 = vmul.f32 %v3170_v60, %v1489_v5 }
 0x362   : > { %1717 = vst [vmem:[%s3183_s25 + $0x58] sm:$0xff] %v1685_v7  ;;  %v1514_v11 = vpop.permute.xlu0 %1513 }
 0x363   : > { %v1682_v4 = vsel %vm1673_vm6, %v1484_v0, %v1647_v10  ;;  %v1648_v12 = vadd.f32 %v1616_v3, %v3057_v1  ;;  %v1621_v13 = vmul.f32 %v3170_v60, %v1514_v11 }
 0x364   : > { %1714 = vst [vmem:[%s3183_s25 + $0x40] sm:$0xff] %v1682_v4  ;;  %v1519_v14 = vpop.permute.xlu1 %1518 }
 0x365   : > { %v1683_v15 = vsel %vm1673_vm6, %v1489_v5, %v1648_v12  ;;  %v1653_v8 = vadd.f32 %v1621_v13, %v3062_v22  ;;  %v1622_v37 = vmul.f32 %v3170_v60, %v1519_v14 }
 0x366   : > { %1715 = vst [vmem:[%s3183_s25 + $0x48] sm:$0xff] %v1683_v15  ;;  %v1504_v39 = vpop.permute.xlu0 %1503 }
 0x367   : > { %v1688_v16 = vsel %vm1673_vm6, %v1514_v11, %v1653_v8  ;;  %v1654_v1 = vadd.f32 %v1622_v37, %v3069_v31  ;;  %v1619_v18 = vmul.f32 %v3170_v60, %v1504_v39 }
 0x368   : > { %1720 = vst [vmem:[%s3183_s25 + $0x70] sm:$0xff] %v1688_v16  ;;  %v1509_v19 = vpop.permute.xlu1 %1508 }
 0x369   : > { %v1689_v20 = vsel %vm1673_vm6, %v1519_v14, %v1654_v1  ;;  %v1651_v22 = vadd.f32 %v1619_v18, %v3065_v27  ;;  %v1620_v24 = vmul.f32 %v3170_v60, %v1509_v19 }
 0x36a   : > { %1721 = vst [vmem:[%s3183_s25 + $0x78] sm:$0xff] %v1689_v20 }
 0x36b   : > { %v1686_v26 = vsel %vm1673_vm6, %v1504_v39, %v1651_v22  ;;  %v1652_v28 = vadd.f32 %v1620_v24, %v3073_v34  ;;  %v1534_v42 = vpop.permute.xlu0 %1533 }
 0x36c   : > { %1718 = vst [vmem:[%s3183_s25 + $0x60] sm:$0xff] %v1686_v26  ;;  %v1625_v31 = vmul.f32 %v3170_v60, %v1534_v42 }
 0x36d   : > { %v1687_v45 = vsel %vm1673_vm6, %v1509_v19, %v1652_v28  ;;  %v1539_v25 = vpop.permute.xlu1 %1538 }
 0x36e   : > { %1719 = vst [vmem:[%s3183_s25 + $0x68] sm:$0xff] %v1687_v45  ;;  %v1657_v27 = vadd.f32 %v1625_v31, %v3078_v50  ;;  %v1626_v32 = vmul.f32 %v3170_v60, %v1539_v25 }
 0x36f   : > { %v1524_v36 = vpop.permute.xlu0 %1523 }
 0x370   : > { %v1692_v40 = vsel %vm1673_vm6, %v1534_v42, %v1657_v27  ;;  %v1658_v34 = vadd.f32 %v1626_v32, %v3085_v62  ;;  %v1623_v41 = vmul.f32 %v3170_v60, %v1524_v36 }
 0x371   : > { %1724 = vst [vmem:[%s3183_s25 + $0x90] sm:$0xff] %v1692_v40  ;;  %v1529_v43 = vpop.permute.xlu1 %1528 }
 0x372   : > { %v1693_v49 = vsel %vm1673_vm6, %v1539_v25, %v1658_v34  ;;  %v1655_v54 = vadd.f32 %v1623_v41, %v3081_v56  ;;  %v1624_v50 = vmul.f32 %v3170_v60, %v1529_v43 }
 0x373   : > { %1725 = vst [vmem:[%s3183_s25 + $0x98] sm:$0xff] %v1693_v49  ;;  %v1554_v44 = vpop.permute.xlu0 %1553 }
 0x374   : > { %v1690_v47 = vsel %vm1673_vm6, %v1524_v36, %v1655_v54  ;;  %v1656_v62 = vadd.f32 %v1624_v50, %v3089_v6  ;;  %v1629_v52 = vmul.f32 %v3170_v60, %v1554_v44 }
 0x375   : > { %1722 = vst [vmem:[%s3183_s25 + $0x80] sm:$0xff] %v1690_v47  ;;  %v1559_v53 = vpop.permute.xlu1 %1558 }
 0x376   : > { %v1691_v55 = vsel %vm1673_vm6, %v1529_v43, %v1656_v62  ;;  %v1661_v56 = vadd.f32 %v1629_v52, %v3094_v17  ;;  %v1630_v59 = vmul.f32 %v3170_v60, %v1559_v53 }
 0x377   : > { %1723 = vst [vmem:[%s3183_s25 + $0x88] sm:$0xff] %v1691_v55  ;;  %v1544_v51 = vpop.permute.xlu0 %1543 }
 0x378   : > { %v1696_v0 = vsel %vm1673_vm6, %v1554_v44, %v1661_v56  ;;  %v1662_v6 = vadd.f32 %v1630_v59, %v3101_v29  ;;  %v1627_v57 = vmul.f32 %v3170_v60, %v1544_v51 }
 0x379   : > { %1728 = vst [vmem:[%s3183_s25 + $0xb0] sm:$0xff] %v1696_v0  ;;  %v1549_v35 = vpop.permute.xlu1 %1548 }
 0x37a   : > { %v1697_v2 = vsel %vm1673_vm6, %v1559_v53, %v1662_v6  ;;  %v1659_v17 = vadd.f32 %v1627_v57, %v3097_v21  ;;  %v1628_v5 = vmul.f32 %v3170_v60, %v1549_v35 }
 0x37b   : > { %1729 = vst [vmem:[%s3183_s25 + $0xb8] sm:$0xff] %v1697_v2 }
 0x37c   : > { %v1694_v7 = vsel %vm1673_vm6, %v1544_v51, %v1659_v17  ;;  %v1660_v10 = vadd.f32 %v1628_v5, %v3105_v33  ;;  %v1574_v3 = vpop.permute.xlu0 %1573 }
 0x37d   : > { %1726 = vst [vmem:[%s3183_s25 + $0xa0] sm:$0xff] %v1694_v7  ;;  %v1633_v29 = vmul.f32 %v3170_v60, %v1574_v3 }
 0x37e   : > { %v1695_v11 = vsel %vm1673_vm6, %v1549_v35, %v1660_v10  ;;  %v1579_v4 = vpop.permute.xlu1 %1578 }
 0x37f   : > { %1727 = vst [vmem:[%s3183_s25 + $0xa8] sm:$0xff] %v1695_v11  ;;  %v1665_v21 = vadd.f32 %v1633_v29, %v3110_v48  ;;  %v1634_v12 = vmul.f32 %v3170_v60, %v1579_v4 }
 0x380   : > { %v1564_v13 = vpop.permute.xlu0 %1563 }
 0x381   : > { %v1700_v14 = vsel %vm1673_vm6, %v1574_v3, %v1665_v21  ;;  %v1666_v33 = vadd.f32 %v1634_v12, %v3116_v63  ;;  %v1631_v15 = vmul.f32 %v3170_v60, %v1564_v13 }
 0x382   : > { %1732 = vst [vmem:[%s3183_s25 + $0xd0] sm:$0xff] %v1700_v14  ;;  %v1569_v8 = vpop.permute.xlu1 %1568 }
 0x383   : > { %v1701_v37 = vsel %vm1673_vm6, %v1579_v4, %v1666_v33  ;;  %v1663_v39 = vadd.f32 %v1631_v15, %v3113_v58  ;;  %v1632_v48 = vmul.f32 %v3170_v60, %v1569_v8 }
 0x384   : > { %1733 = vst [vmem:[%s3183_s25 + $0xd8] sm:$0xff] %v1701_v37 }
 0x385   : > { %v1698_v16 = vsel %vm1673_vm6, %v1564_v13, %v1663_v39  ;;  %v1664_v1 = vadd.f32 %v1632_v48, %v3120_v9  ;;  %v1584_v63 = vpop.permute.xlu0 %1583 }
 0x386   : > { %1730 = vst [vmem:[%s3183_s25 + $0xc0] sm:$0xff] %v1698_v16  ;;  %v1635_v18 = vmul.f32 %v3170_v60, %v1584_v63 }
 0x387   : > { %v1699_v19 = vsel %vm1673_vm6, %v1569_v8, %v1664_v1  ;;  %v1589_v58 = vpop.permute.xlu1 %1588 }
 0x388   : > { %1731 = vst [vmem:[%s3183_s25 + $0xc8] sm:$0xff] %v1699_v19  ;;  %v1667_v20 = vadd.f32 %v1635_v18, %v3129_v30  ;;  %v1636_v22 = vmul.f32 %v3170_v60, %v1589_v58 }
 0x389   : > { %v1594_v24 = vpop.permute.xlu0 %1593 }
 0x38a   : > { %v1702_v9 = vsel %vm1673_vm6, %v1584_v63, %v1667_v20  ;;  %v1668_v26 = vadd.f32 %v1636_v22, %v3136_v46  ;;  %v1637_v28 = vmul.f32 %v3170_v60, %v1594_v24 }
 0x38b   : > { %1734 = vst [vmem:[%s3183_s25 + $0xe0] sm:$0xff] %v1702_v9  ;;  %v1599_v42 = vpop.permute.xlu1 %1598 }
 0x38c   : > { %v1703_v30 = vsel %vm1673_vm6, %v1589_v58, %v1668_v26  ;;  %v1669_v31 = vadd.f32 %v1637_v28, %v3126_v23  ;;  %v1638_v45 = vmul.f32 %v3170_v60, %v1599_v42 }
 0x38d   : > { %1735 = vst [vmem:[%s3183_s25 + $0xe8] sm:$0xff] %v1703_v30 }
 0x38e   : > { %v1704_v46 = vsel %vm1673_vm6, %v1594_v24, %v1669_v31  ;;  %v1670_v25 = vadd.f32 %v1638_v45, %v3132_v38 }
 0x38f   : > { %1736 = vst [vmem:[%s3183_s25 + $0xf0] sm:$0xff] %v1704_v46 }
 0x390   : > { %v1705_v23 = vsel %vm1673_vm6, %v1599_v42, %v1670_v25 }
 0x391   : > { %1737 = vst [vmem:[%s3183_s25 + $0xf8] sm:$0xff] %v1705_v23 }
 0x392   : > { %2622 = shalt.err (!%p2619_p10)
}
 0x393   : > { %s2623_s24 = scalar_lea.hbm %s3339_s27, 4096  ;;  %s2627_s18 = scalar_lea.hbm %s3401_s8, 8192 }
 0x394   : > { %p2624_p11 = scmp.ne.s32.totalorder %s3339_s27, %s2623_s24  ;;  %p2628_p0 = scmp.lt.u32.totalorder %s3339_s27, %s3401_s8 }
 0x395   : > { %p2629_p1 = scmp.lt.u32.totalorder %s2627_s18, %s2623_s24  ;;  %p2631_p3 = scmp.lt.u32.totalorder %s2623_s24, %s3339_s27 }
 0x396   : > { %p2625_p12 = pnand %p2624_p11, %p2789_p4 }
 0x397   : > { %p2630_p2 = por %p2629_p1, %p2628_p0 }
 0x398   : > { %p2626_p13 = pneg %p2625_p12 }
 0x399   : > { %p2632_p5 = por %p2631_p3, %p2630_p2 }
 0x39b   : > { %p2633_p6 = pnand %p2632_p5, %p2626_p13 }
 0x39d   : > { %2636 = shalt.err (!%p2633_p6)
}
 0x39e   : > { %s2697_s20 = smov 128   ;;  %s2698_s0 = smov 8  }
 0x39f   : > { %2366 = dma.vmem_to_hbm [thread:$0]  (%p2789_p4), %s3341_s29, 4096, %s3339_s27, %s1941_s12, %s2697_s20, %s2697_s20, %s2698_s0  }
 0x3a0 PF: > { %p2377_p7 = scmp.ge.s32.totalorder %s2691_s14, 2  ;;  %s1989_s15 = sand.u32 1, %s2671_s30  }
 0x3a1   : > { %s1990_s24 = scalar_lea.sflag [#allocation3], %s1989_s15 }
 0x3a2   : > { %p2371_p9 = pnand %p2377_p7, %p2796_p8 }
 0x3a4   : > { %2662 = dma.done.wait (!%p2371_p9), %s1990_s24, 4096  }
 0x3a5   : > { %2664 = vsyncadd (!%p2371_p9), %s1990_s24, 4294963200  ;;  %s1999_s25 = scalar_lea.sflag [#allocation5], %s1989_s15 }
 0x3a6   : > { %2666 = dma.done.wait (!%p2371_p9), %s1999_s25, 16  }
 0x3a7   : > { %2668 = vsyncadd (!%p2371_p9), %s1999_s25, 4294967280  ;;  %s26_s14 = sadd.s32 1, %s2691_s14   ;;  %s3407_s30 = smov %s2675_s10 }
 0x3a8   : > { %p23_p10 = scmp.ge.s32.totalorder %s26_s14, 4   ;;  %s3408_s10 = smov %s2679_s11 }
 0x3a9   : > { %s3409_s11 = smov %s2802_s22  ;;  %s3410_s12 = smov %s2687_s13 }
 0x3aa   : > { %s3411_s13 = smov %s3413_s17  ;;  %25 = sbr.rel (!%p23_p10) target bundleno = 8 (0x8), region = 104 }
 0x3b1   :  { %2003 = vsyncpa [#allocation3], 1 }
 0x3b2   :  { %2005 = vsyncpa [#allocation3 + $0x1], 1 }
 0x3b3   :  { %2006 = vsyncpa [#allocation5], 1 }
 0x3b4   :  { %2008 = vsyncpa [#allocation5 + $0x1], 1 }

</bundles_post_ra>
